<compile_context>
chip_gen: v7x
topology: tpu7x:2x2x1
jax: 0.10.0
libtpu: 0.0.40
codegen_flags: <defaults>
</compile_context>

<pallas_src>
import numpy as np
import jax
import jax.numpy as jnp
from jax.experimental import pallas as pl
from jax.experimental.pallas import tpu as pltpu

RX, RY = 2, 2          # box filter radii (rx, ry)
EPS = 1e-9             # guided filter eps


# ---------------------------------------------------------------------------
# Host-side constant setup
# ---------------------------------------------------------------------------
def bilinear_matrix(out_size, in_size):
    """Row-interp matrix for F.interpolate(mode='bilinear', align_corners=True)."""
    w = np.zeros((out_size, in_size), dtype=np.float32)
    if out_size == 1:
        w[0, 0] = 1.0
    else:
        for io in range(out_size):
            src = io * (in_size - 1) / (out_size - 1)
            i0 = min(int(np.floor(src)), in_size - 1)
            i1 = min(i0 + 1, in_size - 1)
            w1 = src - i0
            w[io, i0] += 1.0 - w1
            w[io, i1] += w1
    return jnp.asarray(w)


def _vmem_capacity_bytes():
    """Per-core VMEM capacity; conservative v7x default if the query fails."""
    try:
        info = pltpu.get_tpu_info()
        for name in ("vmem_capacity_bytes", "vmem_bytes"):
            cap = getattr(info, name, None)
            if cap:
                return int(cap)
    except Exception:
        pass
    return 64 * 1024 * 1024


def _pick_row_tile(hh, wh, h_lr, w_lr, vmem_cap):
    """Largest multiple-of-8 divisor of hh whose Stage-2 working set fits VMEM."""
    if hh % 8 != 0:
        return hh                       # correctness fallback (perf-only concern)
    budget = int(vmem_cap * 0.45)       # leave headroom for compiler scratch
    # Grid-invariant, single-buffered operands (Wc, A, b) are tile-independent.
    fixed = 4 * (w_lr * wh + 2 * h_lr * w_lr)
    # Per-row cost: double-buffered hX tile + out tile + Wr tile.
    per_row = 4 * (2 * wh + 2 * wh + 2 * h_lr)
    max_rows = max(8, (budget - fixed) // max(per_row, 1))
    best = 8 if hh >= 8 else hh
    t = 8
    while t <= hh:
        if hh % t == 0 and t <= max_rows:
            best = t
        t += 8
    return best


# ---------------------------------------------------------------------------
# Stage 1: low-res guided-filter coefficients A, b
#   separable circular box filter: sublane pass via wrap-padded scratch,
#   lane pass via pltpu.roll (XLU).
# ---------------------------------------------------------------------------
def _make_coeff_kernel(H, W, rx, ry, eps):
    kh = 2 * rx + 1
    inv_n = 1.0 / float((2 * rx + 1) * (2 * ry + 1))   # boxfilter(ones) is constant
    Hp = H + 2 * rx

    def box(scr, slot, v):
        # --- row (sublane) direction: circular halo in a (Hp, W) scratch -----
        scr[slot, rx:rx + H, :] = v
        scr[slot, 0:rx, :] = scr[slot, H:H + rx, :]          # top halo <- bottom rows
        scr[slot, rx + H:Hp, :] = scr[slot, rx:2 * rx, :]    # bottom halo <- top rows
        r = scr[slot, 0:H, :]                                # first tap (no zero-init)
        for dr in range(1, kh):
            r = r + scr[slot, dr:dr + H, :]
        # --- column (lane) direction: circular by construction via rolls -----
        c = r
        for d in range(1, ry + 1):
            c = c + pltpu.roll(r, d, axis=1) + pltpu.roll(r, W - d, axis=1)
        return c

    def kernel(x_ref, y_ref, a_ref, b_ref, scr):
        x = x_ref[0]
        y = y_ref[0]

        mean_x = box(scr, 0, x) * inv_n
        mean_y = box(scr, 1, y) * inv_n
        var_x = box(scr, 0, x * x) * inv_n - mean_x * mean_x
        cov_xy = box(scr, 1, x * y) * inv_n - mean_x * mean_y

        d = var_x + eps
        inv = pl.reciprocal(d, approx=True)      # EUP seed (free slot)
        inv = inv * (2.0 - d * inv)              # one Newton step -> ~f32 exact
        coef_a = cov_xy * inv
        coef_b = mean_y - coef_a * mean_x

        # Second (smoothing) box pass on A and b, reusing the scratch.
        a_ref[0] = box(scr, 0, coef_a) * inv_n
        b_ref[0] = box(scr, 1, coef_b) * inv_n

    return kernel, Hp


# ---------------------------------------------------------------------------
# Stage 2: bilinear upsample (align_corners=True) + affine apply, row-tiled
# ---------------------------------------------------------------------------
def _apply_kernel(a_ref, b_ref, hx_ref, wr_ref, wc_ref, out_ref):
    f32 = jnp.float32
    prec = jax.lax.Precision.HIGH          # 3-pass f32: ~1e-6 rel err, 2x MXU vs HIGHEST
    wr = wr_ref[...]                       # (tile, H)
    # Row upsample of A and b for this row tile.
    ta = jnp.dot(wr, a_ref[0], preferred_element_type=f32, precision=prec)
    tb = jnp.dot(wr, b_ref[0], preferred_element_type=f32, precision=prec)
    # Batch the column upsample: one (2*tile, W) @ (W, Wh) MXU pass for A and b.
    t = jnp.concatenate([ta, tb], axis=0)  # sublane-aligned stack (tile % 8 == 0)
    u = jnp.dot(t, wc_ref[...], preferred_element_type=f32, precision=prec)
    tile = wr.shape[0]
    # TODO(synk): on v5e an optional bf16 store here (and bf16 hX stream) trades
    # ~1e-3 accuracy for ~1.8x HBM bandwidth; left in f32 to keep tolerance margin.
    out_ref[0] = u[:tile] * hx_ref[0] + u[tile:]


# ---------------------------------------------------------------------------
# Wrapper
# ---------------------------------------------------------------------------
def guided_filter_hr_fast(xx, yy, hX, rx=RX, ry=RY, eps=EPS, row_tile=None):
    """Forward pass of GuidedFilterHR_fast with angleList == [0]."""
    B, C, H, W = xx.shape
    assert C == 1, "BoxFilter conv kernel is (1,1,kh,kw) -> single channel"
    Bh, Ch, Hh, Wh = hX.shape
    assert Bh == B and Ch == 1
    assert 2 * rx <= H and 2 * ry <= W, "box radius must fit the low-res image"

    x = xx[:, 0].astype(jnp.float32)
    y = yy[:, 0].astype(jnp.float32)
    hx = hX[:, 0].astype(jnp.float32)

    vmem_cap = _vmem_capacity_bytes()
    vmem_limit = int(vmem_cap * 0.85)      # raise the default scoped limit, keep headroom

    # --- stage 1: low-res coefficients A, b ----------------------------------
    coeff_kernel, Hp = _make_coeff_kernel(H, W, rx, ry, eps)
    a_lr, b_lr = pl.pallas_call(
        coeff_kernel,
        out_shape=(jax.ShapeDtypeStruct((B, H, W), jnp.float32),
                   jax.ShapeDtypeStruct((B, H, W), jnp.float32)),
        grid=(B,),
        in_specs=[pl.BlockSpec((1, H, W), lambda i: (i, 0, 0)),
                  pl.BlockSpec((1, H, W), lambda i: (i, 0, 0))],
        out_specs=(pl.BlockSpec((1, H, W), lambda i: (i, 0, 0)),
                   pl.BlockSpec((1, H, W), lambda i: (i, 0, 0))),
        scratch_shapes=[pltpu.VMEM((2, Hp, W), jnp.float32)],
        compiler_params=pltpu.CompilerParams(
            dimension_semantics=("parallel",),
            vmem_limit_bytes=vmem_limit),
    )(x, y)

    # --- stage 2: upsample + apply, tiled over Hh rows ------------------------
    wr = bilinear_matrix(Hh, H)                   # (Hh, H)
    wc = jnp.transpose(bilinear_matrix(Wh, W))    # (W, Wh)

    t_hh = row_tile if row_tile is not None else _pick_row_tile(Hh, Wh, H, W, vmem_cap)
    assert Hh % t_hh == 0 and (t_hh % 8 == 0 or t_hh == Hh)
    n_tiles = Hh // t_hh

    # Advisory cost so XLA overlaps the surrounding graph with this call.
    flops = int(B * (4 * Hh * H * W + 4 * Hh * W * Wh + 2 * Hh * Wh))
    bytes_accessed = int(4 * (2 * B * H * W + 2 * B * Hh * Wh + Hh * H + W * Wh))
    cost = pl.CostEstimate(flops=flops, transcendentals=0,
                           bytes_accessed=bytes_accessed)

    def stage2(single_buffer):
        def inv_spec(shape, imap):
            # Grid-(inner-axis-)invariant operands: 1-deep buffering saves VMEM,
            # no extra DMA since the block index never changes on the inner axis.
            if single_buffer:
                return pl.BlockSpec(shape, imap, pipeline_mode=pl.Buffered(1))
            return pl.BlockSpec(shape, imap)

        in_specs = [
            inv_spec((1, H, W), lambda i, j: (i, 0, 0)),          # A (per batch)
            inv_spec((1, H, W), lambda i, j: (i, 0, 0)),          # b (per batch)
            pl.BlockSpec((1, t_hh, Wh), lambda i, j: (i, j, 0)),  # hX row tile
            pl.BlockSpec((t_hh, H), lambda i, j: (j, 0)),         # Wr row tile
            inv_spec((W, Wh), lambda i, j: (0, 0)),               # Wc (grid-invariant)
        ]
        return pl.pallas_call(
            _apply_kernel,
            out_shape=jax.ShapeDtypeStruct((B, Hh, Wh), jnp.float32),
            grid=(B, n_tiles),
            in_specs=in_specs,
            out_specs=pl.BlockSpec((1, t_hh, Wh), lambda i, j: (i, j, 0)),
            compiler_params=pltpu.CompilerParams(
                dimension_semantics=("parallel", "parallel"),
                vmem_limit_bytes=vmem_limit),
            cost_estimate=cost,
        )(a_lr, b_lr, hx, wr, wc)

    try:
        out = stage2(single_buffer=True)
    except Exception:
        # pipeline_mode / Buffered(1) not supported by this jax build: fall back
        # to default double buffering (identical numerics, slightly more VMEM).
        out = stage2(single_buffer=False)

    return out[:, None, :, :]   # back to NCHW


# ---------------------------------------------------------------------------
# Pure-JAX reference (circular-pad box filter via rolls, matrix bilinear)
# ---------------------------------------------------------------------------
def _box_ref(v, rx, ry):
    out = jnp.zeros_like(v)
    for dr in range(-rx, rx + 1):
        for dc in range(-ry, ry + 1):
            out = out + jnp.roll(v, (dr, dc), axis=(1, 2))
    return out


def reference(xx, yy, hX, rx, ry, eps):
    x = xx[:, 0].astype(jnp.float32)
    y = yy[:, 0].astype(jnp.float32)
    hx = hX[:, 0].astype(jnp.float32)
    _, H, W = x.shape
    _, Hh, Wh = hx.shape

    n = _box_ref(jnp.ones((1, H, W), jnp.float32), rx, ry)
    mean_x = _box_ref(x, rx, ry) / n
    var_x = _box_ref(x * x, rx, ry) / n - mean_x * mean_x
    mean_y = _box_ref(y, rx, ry) / n
    cov_xy = _box_ref(x * y, rx, ry) / n - mean_x * mean_y
    a = cov_xy / (var_x + eps)
    b = mean_y - a * mean_x
    a = _box_ref(a, rx, ry) / n
    b = _box_ref(b, rx, ry) / n

    wr = bilinear_matrix(Hh, H)
    wc = bilinear_matrix(Wh, W)
    ha = jnp.einsum('oi,bij,pj->bop', wr, a, wc, precision='highest')
    hb = jnp.einsum('oi,bij,pj->bop', wr, b, wc, precision='highest')
    return (ha * hx + hb)[:, None, :, :]


if __name__ == "__main__":
    key = jax.random.PRNGKey(0)
    k1, k2, k3 = jax.random.split(key, 3)

    B, C, H, W = 2, 1, 16, 128    # low-res xx / yy
    Hh, Wh = 32, 256              # high-res hX

    xx = jax.random.uniform(k1, (B, C, H, W), dtype=jnp.float32)
    noise = jax.random.uniform(k2, (B, C, H, W), dtype=jnp.float32)
    yy = 0.8 * xx + 0.2 * noise
    hX = jax.random.uniform(k3, (B, C, Hh, Wh), dtype=jnp.float32)

    ref = jax.block_until_ready(reference(xx, yy, hX, RX, RY, EPS))

    # row_tile=16 -> 2 row tiles per image (exercises the tiled HR-apply path);
    # row_tile=None -> VMEM-budget-aware automatic tile.
    for rt in (16, None):
        out = jax.block_until_ready(guided_filter_hr_fast(xx, yy, hX, row_tile=rt))
        assert out.shape == (B, C, Hh, Wh)
        if not np.allclose(np.asarray(out), np.asarray(ref), rtol=1e-3, atol=1e-3):
            raise AssertionError(
                f"Pallas kernel mismatch vs reference (row_tile={rt}): max abs diff = "
                f"{np.max(np.abs(np.asarray(out) - np.asarray(ref)))}")

    print("KERNEL_OK")
</pallas_src>

<mosaic_0001>
module attributes {stable_mosaic.version = 11 : i64} {
  func.func @kernel(%arg0: i32, %arg1: memref<1x16x128xf32, #tpu.memory_space<vmem>>, %arg2: memref<1x16x128xf32, #tpu.memory_space<vmem>>, %arg3: memref<1x16x128xf32, #tpu.memory_space<vmem>>, %arg4: memref<1x16x128xf32, #tpu.memory_space<vmem>>, %arg5: memref<2x20x128xf32, #tpu.memory_space<vmem>>) attributes {dimension_semantics = [#tpu.dimension_semantics<parallel>], iteration_bounds = array<i64: 2>, scalar_prefetch = 0 : i64, scratch_operands = 1 : i64, tpu.core_type = #tpu.core_type<tc>, window_params = [{transform_indices = @transform_0, window_bounds = array<i64: 1, 16, 128>}, {transform_indices = @transform_1, window_bounds = array<i64: 1, 16, 128>}, {transform_indices = @transform_2, window_bounds = array<i64: 1, 16, 128>}, {transform_indices = @transform_3, window_bounds = array<i64: 1, 16, 128>}]} {
    %c0 = arith.constant 0 : index
    %c0_0 = arith.constant 0 : index
    %c0_1 = arith.constant 0 : index
    %0 = vector.load %arg1[%c0, %c0_0, %c0_1] : memref<1x16x128xf32, #tpu.memory_space<vmem>>, vector<1x16x128xf32>
    %1 = vector.shape_cast %0 : vector<1x16x128xf32> to vector<16x128xf32>
    %c0_2 = arith.constant 0 : index
    %c0_3 = arith.constant 0 : index
    %c0_4 = arith.constant 0 : index
    %2 = vector.load %arg2[%c0_2, %c0_3, %c0_4] : memref<1x16x128xf32, #tpu.memory_space<vmem>>, vector<1x16x128xf32>
    %3 = vector.shape_cast %2 : vector<1x16x128xf32> to vector<16x128xf32>
    %c0_5 = arith.constant 0 : index
    %c2 = arith.constant 2 : index
    %c0_6 = arith.constant 0 : index
    %4 = vector.load %arg5[%c0_5, %c2, %c0_6] : memref<2x20x128xf32, #tpu.memory_space<vmem>>, vector<1x16x128xf32>
    %5 = vector.shape_cast %4 : vector<1x16x128xf32> to vector<16x128xf32>
    %6 = vector.shape_cast %1 : vector<16x128xf32> to vector<1x16x128xf32>
    tpu.vector_store %arg5[%c0_5, %c2, %c0_6], %6 {strides = array<i32>} : memref<2x20x128xf32, #tpu.memory_space<vmem>>, vector<1x16x128xf32>,
    %c0_7 = arith.constant 0 : index
    %c16 = arith.constant 16 : index
    %c0_8 = arith.constant 0 : index
    %7 = vector.load %arg5[%c0_7, %c16, %c0_8] : memref<2x20x128xf32, #tpu.memory_space<vmem>>, vector<1x2x128xf32>
    %8 = vector.shape_cast %7 : vector<1x2x128xf32> to vector<2x128xf32>
    %c0_9 = arith.constant 0 : index
    %c0_10 = arith.constant 0 : index
    %c0_11 = arith.constant 0 : index
    %9 = vector.load %arg5[%c0_9, %c0_10, %c0_11] : memref<2x20x128xf32, #tpu.memory_space<vmem>>, vector<1x2x128xf32>
    %10 = vector.shape_cast %9 : vector<1x2x128xf32> to vector<2x128xf32>
    %11 = vector.shape_cast %8 : vector<2x128xf32> to vector<1x2x128xf32>
    tpu.vector_store %arg5[%c0_9, %c0_10, %c0_11], %11 {strides = array<i32>} : memref<2x20x128xf32, #tpu.memory_space<vmem>>, vector<1x2x128xf32>,
    %c0_12 = arith.constant 0 : index
    %c2_13 = arith.constant 2 : index
    %c0_14 = arith.constant 0 : index
    %12 = vector.load %arg5[%c0_12, %c2_13, %c0_14] : memref<2x20x128xf32, #tpu.memory_space<vmem>>, vector<1x2x128xf32>
    %13 = vector.shape_cast %12 : vector<1x2x128xf32> to vector<2x128xf32>
    %c0_15 = arith.constant 0 : index
    %c18 = arith.constant 18 : index
    %c0_16 = arith.constant 0 : index
    %14 = vector.load %arg5[%c0_15, %c18, %c0_16] : memref<2x20x128xf32, #tpu.memory_space<vmem>>, vector<1x2x128xf32>
    %15 = vector.shape_cast %14 : vector<1x2x128xf32> to vector<2x128xf32>
    %16 = vector.shape_cast %13 : vector<2x128xf32> to vector<1x2x128xf32>
    tpu.vector_store %arg5[%c0_15, %c18, %c0_16], %16 {strides = array<i32>} : memref<2x20x128xf32, #tpu.memory_space<vmem>>, vector<1x2x128xf32>,
    %c0_17 = arith.constant 0 : index
    %c0_18 = arith.constant 0 : index
    %c0_19 = arith.constant 0 : index
    %17 = vector.load %arg5[%c0_17, %c0_18, %c0_19] : memref<2x20x128xf32, #tpu.memory_space<vmem>>, vector<1x16x128xf32>
    %18 = vector.shape_cast %17 : vector<1x16x128xf32> to vector<16x128xf32>
    %c0_20 = arith.constant 0 : index
    %c1 = arith.constant 1 : index
    %c0_21 = arith.constant 0 : index
    %19 = vector.load %arg5[%c0_20, %c1, %c0_21] : memref<2x20x128xf32, #tpu.memory_space<vmem>>, vector<1x16x128xf32>
    %20 = vector.shape_cast %19 : vector<1x16x128xf32> to vector<16x128xf32>
    %21 = arith.addf %18, %20 : vector<16x128xf32>
    %c0_22 = arith.constant 0 : index
    %c2_23 = arith.constant 2 : index
    %c0_24 = arith.constant 0 : index
    %22 = vector.load %arg5[%c0_22, %c2_23, %c0_24] : memref<2x20x128xf32, #tpu.memory_space<vmem>>, vector<1x16x128xf32>
    %23 = vector.shape_cast %22 : vector<1x16x128xf32> to vector<16x128xf32>
    %24 = arith.addf %21, %23 : vector<16x128xf32>
    %c0_25 = arith.constant 0 : index
    %c3 = arith.constant 3 : index
    %c0_26 = arith.constant 0 : index
    %25 = vector.load %arg5[%c0_25, %c3, %c0_26] : memref<2x20x128xf32, #tpu.memory_space<vmem>>, vector<1x16x128xf32>
    %26 = vector.shape_cast %25 : vector<1x16x128xf32> to vector<16x128xf32>
    %27 = arith.addf %24, %26 : vector<16x128xf32>
    %c0_27 = arith.constant 0 : index
    %c4 = arith.constant 4 : index
    %c0_28 = arith.constant 0 : index
    %28 = vector.load %arg5[%c0_27, %c4, %c0_28] : memref<2x20x128xf32, #tpu.memory_space<vmem>>, vector<1x16x128xf32>
    %29 = vector.shape_cast %28 : vector<1x16x128xf32> to vector<16x128xf32>
    %30 = arith.addf %27, %29 : vector<16x128xf32>
    %c1_i32 = arith.constant 1 : i32
    %31 = tpu.dynamic_rotate %30 by %c1_i32 dim 1 : vector<16x128xf32>, i32 -> vector<16x128xf32>
    %32 = arith.addf %30, %31 : vector<16x128xf32>
    %c127_i32 = arith.constant 127 : i32
    %33 = tpu.dynamic_rotate %30 by %c127_i32 dim 1 : vector<16x128xf32>, i32 -> vector<16x128xf32>
    %34 = arith.addf %32, %33 : vector<16x128xf32>
    %c2_i32 = arith.constant 2 : i32
    %35 = tpu.dynamic_rotate %30 by %c2_i32 dim 1 : vector<16x128xf32>, i32 -> vector<16x128xf32>
    %36 = arith.addf %34, %35 : vector<16x128xf32>
    %c126_i32 = arith.constant 126 : i32
    %37 = tpu.dynamic_rotate %30 by %c126_i32 dim 1 : vector<16x128xf32>, i32 -> vector<16x128xf32>
    %38 = arith.addf %36, %37 : vector<16x128xf32>
    %cst = arith.constant 4.000000e-02 : f32
    %39 = vector.broadcast %cst : f32 to vector<16x128xf32>
    %40 = arith.mulf %38, %39 : vector<16x128xf32>
    %c1_29 = arith.constant 1 : index
    %c2_30 = arith.constant 2 : index
    %c0_31 = arith.constant 0 : index
    %41 = vector.load %arg5[%c1_29, %c2_30, %c0_31] : memref<2x20x128xf32, #tpu.memory_space<vmem>>, vector<1x16x128xf32>
    %42 = vector.shape_cast %41 : vector<1x16x128xf32> to vector<16x128xf32>
    %43 = vector.shape_cast %3 : vector<16x128xf32> to vector<1x16x128xf32>
    tpu.vector_store %arg5[%c1_29, %c2_30, %c0_31], %43 {strides = array<i32>} : memref<2x20x128xf32, #tpu.memory_space<vmem>>, vector<1x16x128xf32>,
    %c1_32 = arith.constant 1 : index
    %c16_33 = arith.constant 16 : index
    %c0_34 = arith.constant 0 : index
    %44 = vector.load %arg5[%c1_32, %c16_33, %c0_34] : memref<2x20x128xf32, #tpu.memory_space<vmem>>, vector<1x2x128xf32>
    %45 = vector.shape_cast %44 : vector<1x2x128xf32> to vector<2x128xf32>
    %c1_35 = arith.constant 1 : index
    %c0_36 = arith.constant 0 : index
    %c0_37 = arith.constant 0 : index
    %46 = vector.load %arg5[%c1_35, %c0_36, %c0_37] : memref<2x20x128xf32, #tpu.memory_space<vmem>>, vector<1x2x128xf32>
    %47 = vector.shape_cast %46 : vector<1x2x128xf32> to vector<2x128xf32>
    %48 = vector.shape_cast %45 : vector<2x128xf32> to vector<1x2x128xf32>
    tpu.vector_store %arg5[%c1_35, %c0_36, %c0_37], %48 {strides = array<i32>} : memref<2x20x128xf32, #tpu.memory_space<vmem>>, vector<1x2x128xf32>,
    %c1_38 = arith.constant 1 : index
    %c2_39 = arith.constant 2 : index
    %c0_40 = arith.constant 0 : index
    %49 = vector.load %arg5[%c1_38, %c2_39, %c0_40] : memref<2x20x128xf32, #tpu.memory_space<vmem>>, vector<1x2x128xf32>
    %50 = vector.shape_cast %49 : vector<1x2x128xf32> to vector<2x128xf32>
    %c1_41 = arith.constant 1 : index
    %c18_42 = arith.constant 18 : index
    %c0_43 = arith.constant 0 : index
    %51 = vector.load %arg5[%c1_41, %c18_42, %c0_43] : memref<2x20x128xf32, #tpu.memory_space<vmem>>, vector<1x2x128xf32>
    %52 = vector.shape_cast %51 : vector<1x2x128xf32> to vector<2x128xf32>
    %53 = vector.shape_cast %50 : vector<2x128xf32> to vector<1x2x128xf32>
    tpu.vector_store %arg5[%c1_41, %c18_42, %c0_43], %53 {strides = array<i32>} : memref<2x20x128xf32, #tpu.memory_space<vmem>>, vector<1x2x128xf32>,
    %c1_44 = arith.constant 1 : index
    %c0_45 = arith.constant 0 : index
    %c0_46 = arith.constant 0 : index
    %54 = vector.load %arg5[%c1_44, %c0_45, %c0_46] : memref<2x20x128xf32, #tpu.memory_space<vmem>>, vector<1x16x128xf32>
    %55 = vector.shape_cast %54 : vector<1x16x128xf32> to vector<16x128xf32>
    %c1_47 = arith.constant 1 : index
    %c1_48 = arith.constant 1 : index
    %c0_49 = arith.constant 0 : index
    %56 = vector.load %arg5[%c1_47, %c1_48, %c0_49] : memref<2x20x128xf32, #tpu.memory_space<vmem>>, vector<1x16x128xf32>
    %57 = vector.shape_cast %56 : vector<1x16x128xf32> to vector<16x128xf32>
    %58 = arith.addf %55, %57 : vector<16x128xf32>
    %c1_50 = arith.constant 1 : index
    %c2_51 = arith.constant 2 : index
    %c0_52 = arith.constant 0 : index
    %59 = vector.load %arg5[%c1_50, %c2_51, %c0_52] : memref<2x20x128xf32, #tpu.memory_space<vmem>>, vector<1x16x128xf32>
    %60 = vector.shape_cast %59 : vector<1x16x128xf32> to vector<16x128xf32>
    %61 = arith.addf %58, %60 : vector<16x128xf32>
    %c1_53 = arith.constant 1 : index
    %c3_54 = arith.constant 3 : index
    %c0_55 = arith.constant 0 : index
    %62 = vector.load %arg5[%c1_53, %c3_54, %c0_55] : memref<2x20x128xf32, #tpu.memory_space<vmem>>, vector<1x16x128xf32>
    %63 = vector.shape_cast %62 : vector<1x16x128xf32> to vector<16x128xf32>
    %64 = arith.addf %61, %63 : vector<16x128xf32>
    %c1_56 = arith.constant 1 : index
    %c4_57 = arith.constant 4 : index
    %c0_58 = arith.constant 0 : index
    %65 = vector.load %arg5[%c1_56, %c4_57, %c0_58] : memref<2x20x128xf32, #tpu.memory_space<vmem>>, vector<1x16x128xf32>
    %66 = vector.shape_cast %65 : vector<1x16x128xf32> to vector<16x128xf32>
    %67 = arith.addf %64, %66 : vector<16x128xf32>
    %c1_i32_59 = arith.constant 1 : i32
    %68 = tpu.dynamic_rotate %67 by %c1_i32_59 dim 1 : vector<16x128xf32>, i32 -> vector<16x128xf32>
    %69 = arith.addf %67, %68 : vector<16x128xf32>
    %c127_i32_60 = arith.constant 127 : i32
    %70 = tpu.dynamic_rotate %67 by %c127_i32_60 dim 1 : vector<16x128xf32>, i32 -> vector<16x128xf32>
    %71 = arith.addf %69, %70 : vector<16x128xf32>
    %c2_i32_61 = arith.constant 2 : i32
    %72 = tpu.dynamic_rotate %67 by %c2_i32_61 dim 1 : vector<16x128xf32>, i32 -> vector<16x128xf32>
    %73 = arith.addf %71, %72 : vector<16x128xf32>
    %c126_i32_62 = arith.constant 126 : i32
    %74 = tpu.dynamic_rotate %67 by %c126_i32_62 dim 1 : vector<16x128xf32>, i32 -> vector<16x128xf32>
    %75 = arith.addf %73, %74 : vector<16x128xf32>
    %cst_63 = arith.constant 4.000000e-02 : f32
    %76 = vector.broadcast %cst_63 : f32 to vector<16x128xf32>
    %77 = arith.mulf %75, %76 : vector<16x128xf32>
    %78 = arith.mulf %1, %1 : vector<16x128xf32>
    %c0_64 = arith.constant 0 : index
    %c2_65 = arith.constant 2 : index
    %c0_66 = arith.constant 0 : index
    %79 = vector.load %arg5[%c0_64, %c2_65, %c0_66] : memref<2x20x128xf32, #tpu.memory_space<vmem>>, vector<1x16x128xf32>
    %80 = vector.shape_cast %79 : vector<1x16x128xf32> to vector<16x128xf32>
    %81 = vector.shape_cast %78 : vector<16x128xf32> to vector<1x16x128xf32>
    tpu.vector_store %arg5[%c0_64, %c2_65, %c0_66], %81 {strides = array<i32>} : memref<2x20x128xf32, #tpu.memory_space<vmem>>, vector<1x16x128xf32>,
    %c0_67 = arith.constant 0 : index
    %c16_68 = arith.constant 16 : index
    %c0_69 = arith.constant 0 : index
    %82 = vector.load %arg5[%c0_67, %c16_68, %c0_69] : memref<2x20x128xf32, #tpu.memory_space<vmem>>, vector<1x2x128xf32>
    %83 = vector.shape_cast %82 : vector<1x2x128xf32> to vector<2x128xf32>
    %c0_70 = arith.constant 0 : index
    %c0_71 = arith.constant 0 : index
    %c0_72 = arith.constant 0 : index
    %84 = vector.load %arg5[%c0_70, %c0_71, %c0_72] : memref<2x20x128xf32, #tpu.memory_space<vmem>>, vector<1x2x128xf32>
    %85 = vector.shape_cast %84 : vector<1x2x128xf32> to vector<2x128xf32>
    %86 = vector.shape_cast %83 : vector<2x128xf32> to vector<1x2x128xf32>
    tpu.vector_store %arg5[%c0_70, %c0_71, %c0_72], %86 {strides = array<i32>} : memref<2x20x128xf32, #tpu.memory_space<vmem>>, vector<1x2x128xf32>,
    %c0_73 = arith.constant 0 : index
    %c2_74 = arith.constant 2 : index
    %c0_75 = arith.constant 0 : index
    %87 = vector.load %arg5[%c0_73, %c2_74, %c0_75] : memref<2x20x128xf32, #tpu.memory_space<vmem>>, vector<1x2x128xf32>
    %88 = vector.shape_cast %87 : vector<1x2x128xf32> to vector<2x128xf32>
    %c0_76 = arith.constant 0 : index
    %c18_77 = arith.constant 18 : index
    %c0_78 = arith.constant 0 : index
    %89 = vector.load %arg5[%c0_76, %c18_77, %c0_78] : memref<2x20x128xf32, #tpu.memory_space<vmem>>, vector<1x2x128xf32>
    %90 = vector.shape_cast %89 : vector<1x2x128xf32> to vector<2x128xf32>
    %91 = vector.shape_cast %88 : vector<2x128xf32> to vector<1x2x128xf32>
    tpu.vector_store %arg5[%c0_76, %c18_77, %c0_78], %91 {strides = array<i32>} : memref<2x20x128xf32, #tpu.memory_space<vmem>>, vector<1x2x128xf32>,
    %c0_79 = arith.constant 0 : index
    %c0_80 = arith.constant 0 : index
    %c0_81 = arith.constant 0 : index
    %92 = vector.load %arg5[%c0_79, %c0_80, %c0_81] : memref<2x20x128xf32, #tpu.memory_space<vmem>>, vector<1x16x128xf32>
    %93 = vector.shape_cast %92 : vector<1x16x128xf32> to vector<16x128xf32>
    %c0_82 = arith.constant 0 : index
    %c1_83 = arith.constant 1 : index
    %c0_84 = arith.constant 0 : index
    %94 = vector.load %arg5[%c0_82, %c1_83, %c0_84] : memref<2x20x128xf32, #tpu.memory_space<vmem>>, vector<1x16x128xf32>
    %95 = vector.shape_cast %94 : vector<1x16x128xf32> to vector<16x128xf32>
    %96 = arith.addf %93, %95 : vector<16x128xf32>
    %c0_85 = arith.constant 0 : index
    %c2_86 = arith.constant 2 : index
    %c0_87 = arith.constant 0 : index
    %97 = vector.load %arg5[%c0_85, %c2_86, %c0_87] : memref<2x20x128xf32, #tpu.memory_space<vmem>>, vector<1x16x128xf32>
    %98 = vector.shape_cast %97 : vector<1x16x128xf32> to vector<16x128xf32>
    %99 = arith.addf %96, %98 : vector<16x128xf32>
    %c0_88 = arith.constant 0 : index
    %c3_89 = arith.constant 3 : index
    %c0_90 = arith.constant 0 : index
    %100 = vector.load %arg5[%c0_88, %c3_89, %c0_90] : memref<2x20x128xf32, #tpu.memory_space<vmem>>, vector<1x16x128xf32>
    %101 = vector.shape_cast %100 : vector<1x16x128xf32> to vector<16x128xf32>
    %102 = arith.addf %99, %101 : vector<16x128xf32>
    %c0_91 = arith.constant 0 : index
    %c4_92 = arith.constant 4 : index
    %c0_93 = arith.constant 0 : index
    %103 = vector.load %arg5[%c0_91, %c4_92, %c0_93] : memref<2x20x128xf32, #tpu.memory_space<vmem>>, vector<1x16x128xf32>
    %104 = vector.shape_cast %103 : vector<1x16x128xf32> to vector<16x128xf32>
    %105 = arith.addf %102, %104 : vector<16x128xf32>
    %c1_i32_94 = arith.constant 1 : i32
    %106 = tpu.dynamic_rotate %105 by %c1_i32_94 dim 1 : vector<16x128xf32>, i32 -> vector<16x128xf32>
    %107 = arith.addf %105, %106 : vector<16x128xf32>
    %c127_i32_95 = arith.constant 127 : i32
    %108 = tpu.dynamic_rotate %105 by %c127_i32_95 dim 1 : vector<16x128xf32>, i32 -> vector<16x128xf32>
    %109 = arith.addf %107, %108 : vector<16x128xf32>
    %c2_i32_96 = arith.constant 2 : i32
    %110 = tpu.dynamic_rotate %105 by %c2_i32_96 dim 1 : vector<16x128xf32>, i32 -> vector<16x128xf32>
    %111 = arith.addf %109, %110 : vector<16x128xf32>
    %c126_i32_97 = arith.constant 126 : i32
    %112 = tpu.dynamic_rotate %105 by %c126_i32_97 dim 1 : vector<16x128xf32>, i32 -> vector<16x128xf32>
    %113 = arith.addf %111, %112 : vector<16x128xf32>
    %cst_98 = arith.constant 4.000000e-02 : f32
    %114 = vector.broadcast %cst_98 : f32 to vector<16x128xf32>
    %115 = arith.mulf %113, %114 : vector<16x128xf32>
    %116 = arith.mulf %40, %40 : vector<16x128xf32>
    %117 = arith.subf %115, %116 : vector<16x128xf32>
    %118 = arith.mulf %1, %3 : vector<16x128xf32>
    %c1_99 = arith.constant 1 : index
    %c2_100 = arith.constant 2 : index
    %c0_101 = arith.constant 0 : index
    %119 = vector.load %arg5[%c1_99, %c2_100, %c0_101] : memref<2x20x128xf32, #tpu.memory_space<vmem>>, vector<1x16x128xf32>
    %120 = vector.shape_cast %119 : vector<1x16x128xf32> to vector<16x128xf32>
    %121 = vector.shape_cast %118 : vector<16x128xf32> to vector<1x16x128xf32>
    tpu.vector_store %arg5[%c1_99, %c2_100, %c0_101], %121 {strides = array<i32>} : memref<2x20x128xf32, #tpu.memory_space<vmem>>, vector<1x16x128xf32>,
    %c1_102 = arith.constant 1 : index
    %c16_103 = arith.constant 16 : index
    %c0_104 = arith.constant 0 : index
    %122 = vector.load %arg5[%c1_102, %c16_103, %c0_104] : memref<2x20x128xf32, #tpu.memory_space<vmem>>, vector<1x2x128xf32>
    %123 = vector.shape_cast %122 : vector<1x2x128xf32> to vector<2x128xf32>
    %c1_105 = arith.constant 1 : index
    %c0_106 = arith.constant 0 : index
    %c0_107 = arith.constant 0 : index
    %124 = vector.load %arg5[%c1_105, %c0_106, %c0_107] : memref<2x20x128xf32, #tpu.memory_space<vmem>>, vector<1x2x128xf32>
    %125 = vector.shape_cast %124 : vector<1x2x128xf32> to vector<2x128xf32>
    %126 = vector.shape_cast %123 : vector<2x128xf32> to vector<1x2x128xf32>
    tpu.vector_store %arg5[%c1_105, %c0_106, %c0_107], %126 {strides = array<i32>} : memref<2x20x128xf32, #tpu.memory_space<vmem>>, vector<1x2x128xf32>,
    %c1_108 = arith.constant 1 : index
    %c2_109 = arith.constant 2 : index
    %c0_110 = arith.constant 0 : index
    %127 = vector.load %arg5[%c1_108, %c2_109, %c0_110] : memref<2x20x128xf32, #tpu.memory_space<vmem>>, vector<1x2x128xf32>
    %128 = vector.shape_cast %127 : vector<1x2x128xf32> to vector<2x128xf32>
    %c1_111 = arith.constant 1 : index
    %c18_112 = arith.constant 18 : index
    %c0_113 = arith.constant 0 : index
    %129 = vector.load %arg5[%c1_111, %c18_112, %c0_113] : memref<2x20x128xf32, #tpu.memory_space<vmem>>, vector<1x2x128xf32>
    %130 = vector.shape_cast %129 : vector<1x2x128xf32> to vector<2x128xf32>
    %131 = vector.shape_cast %128 : vector<2x128xf32> to vector<1x2x128xf32>
    tpu.vector_store %arg5[%c1_111, %c18_112, %c0_113], %131 {strides = array<i32>} : memref<2x20x128xf32, #tpu.memory_space<vmem>>, vector<1x2x128xf32>,
    %c1_114 = arith.constant 1 : index
    %c0_115 = arith.constant 0 : index
    %c0_116 = arith.constant 0 : index
    %132 = vector.load %arg5[%c1_114, %c0_115, %c0_116] : memref<2x20x128xf32, #tpu.memory_space<vmem>>, vector<1x16x128xf32>
    %133 = vector.shape_cast %132 : vector<1x16x128xf32> to vector<16x128xf32>
    %c1_117 = arith.constant 1 : index
    %c1_118 = arith.constant 1 : index
    %c0_119 = arith.constant 0 : index
    %134 = vector.load %arg5[%c1_117, %c1_118, %c0_119] : memref<2x20x128xf32, #tpu.memory_space<vmem>>, vector<1x16x128xf32>
    %135 = vector.shape_cast %134 : vector<1x16x128xf32> to vector<16x128xf32>
    %136 = arith.addf %133, %135 : vector<16x128xf32>
    %c1_120 = arith.constant 1 : index
    %c2_121 = arith.constant 2 : index
    %c0_122 = arith.constant 0 : index
    %137 = vector.load %arg5[%c1_120, %c2_121, %c0_122] : memref<2x20x128xf32, #tpu.memory_space<vmem>>, vector<1x16x128xf32>
    %138 = vector.shape_cast %137 : vector<1x16x128xf32> to vector<16x128xf32>
    %139 = arith.addf %136, %138 : vector<16x128xf32>
    %c1_123 = arith.constant 1 : index
    %c3_124 = arith.constant 3 : index
    %c0_125 = arith.constant 0 : index
    %140 = vector.load %arg5[%c1_123, %c3_124, %c0_125] : memref<2x20x128xf32, #tpu.memory_space<vmem>>, vector<1x16x128xf32>
    %141 = vector.shape_cast %140 : vector<1x16x128xf32> to vector<16x128xf32>
    %142 = arith.addf %139, %141 : vector<16x128xf32>
    %c1_126 = arith.constant 1 : index
    %c4_127 = arith.constant 4 : index
    %c0_128 = arith.constant 0 : index
    %143 = vector.load %arg5[%c1_126, %c4_127, %c0_128] : memref<2x20x128xf32, #tpu.memory_space<vmem>>, vector<1x16x128xf32>
    %144 = vector.shape_cast %143 : vector<1x16x128xf32> to vector<16x128xf32>
    %145 = arith.addf %142, %144 : vector<16x128xf32>
    %c1_i32_129 = arith.constant 1 : i32
    %146 = tpu.dynamic_rotate %145 by %c1_i32_129 dim 1 : vector<16x128xf32>, i32 -> vector<16x128xf32>
    %147 = arith.addf %145, %146 : vector<16x128xf32>
    %c127_i32_130 = arith.constant 127 : i32
    %148 = tpu.dynamic_rotate %145 by %c127_i32_130 dim 1 : vector<16x128xf32>, i32 -> vector<16x128xf32>
    %149 = arith.addf %147, %148 : vector<16x128xf32>
    %c2_i32_131 = arith.constant 2 : i32
    %150 = tpu.dynamic_rotate %145 by %c2_i32_131 dim 1 : vector<16x128xf32>, i32 -> vector<16x128xf32>
    %151 = arith.addf %149, %150 : vector<16x128xf32>
    %c126_i32_132 = arith.constant 126 : i32
    %152 = tpu.dynamic_rotate %145 by %c126_i32_132 dim 1 : vector<16x128xf32>, i32 -> vector<16x128xf32>
    %153 = arith.addf %151, %152 : vector<16x128xf32>
    %cst_133 = arith.constant 4.000000e-02 : f32
    %154 = vector.broadcast %cst_133 : f32 to vector<16x128xf32>
    %155 = arith.mulf %153, %154 : vector<16x128xf32>
    %156 = arith.mulf %40, %77 : vector<16x128xf32>
    %157 = arith.subf %155, %156 : vector<16x128xf32>
    %cst_134 = arith.constant 9.99999971E-10 : f32
    %158 = vector.broadcast %cst_134 : f32 to vector<16x128xf32>
    %159 = arith.addf %117, %158 : vector<16x128xf32>
    %160 = tpu.reciprocal %159 {approx = true} : vector<16x128xf32> -> vector<16x128xf32>
    %161 = arith.mulf %159, %160 : vector<16x128xf32>
    %cst_135 = arith.constant 2.000000e+00 : f32
    %162 = vector.broadcast %cst_135 : f32 to vector<16x128xf32>
    %163 = arith.subf %162, %161 : vector<16x128xf32>
    %164 = arith.mulf %160, %163 : vector<16x128xf32>
    %165 = arith.mulf %157, %164 : vector<16x128xf32>
    %166 = arith.mulf %165, %40 : vector<16x128xf32>
    %167 = arith.subf %77, %166 : vector<16x128xf32>
    %c0_136 = arith.constant 0 : index
    %c2_137 = arith.constant 2 : index
    %c0_138 = arith.constant 0 : index
    %168 = vector.load %arg5[%c0_136, %c2_137, %c0_138] : memref<2x20x128xf32, #tpu.memory_space<vmem>>, vector<1x16x128xf32>
    %169 = vector.shape_cast %168 : vector<1x16x128xf32> to vector<16x128xf32>
    %170 = vector.shape_cast %165 : vector<16x128xf32> to vector<1x16x128xf32>
    tpu.vector_store %arg5[%c0_136, %c2_137, %c0_138], %170 {strides = array<i32>} : memref<2x20x128xf32, #tpu.memory_space<vmem>>, vector<1x16x128xf32>,
    %c0_139 = arith.constant 0 : index
    %c16_140 = arith.constant 16 : index
    %c0_141 = arith.constant 0 : index
    %171 = vector.load %arg5[%c0_139, %c16_140, %c0_141] : memref<2x20x128xf32, #tpu.memory_space<vmem>>, vector<1x2x128xf32>
    %172 = vector.shape_cast %171 : vector<1x2x128xf32> to vector<2x128xf32>
    %c0_142 = arith.constant 0 : index
    %c0_143 = arith.constant 0 : index
    %c0_144 = arith.constant 0 : index
    %173 = vector.load %arg5[%c0_142, %c0_143, %c0_144] : memref<2x20x128xf32, #tpu.memory_space<vmem>>, vector<1x2x128xf32>
    %174 = vector.shape_cast %173 : vector<1x2x128xf32> to vector<2x128xf32>
    %175 = vector.shape_cast %172 : vector<2x128xf32> to vector<1x2x128xf32>
    tpu.vector_store %arg5[%c0_142, %c0_143, %c0_144], %175 {strides = array<i32>} : memref<2x20x128xf32, #tpu.memory_space<vmem>>, vector<1x2x128xf32>,
    %c0_145 = arith.constant 0 : index
    %c2_146 = arith.constant 2 : index
    %c0_147 = arith.constant 0 : index
    %176 = vector.load %arg5[%c0_145, %c2_146, %c0_147] : memref<2x20x128xf32, #tpu.memory_space<vmem>>, vector<1x2x128xf32>
    %177 = vector.shape_cast %176 : vector<1x2x128xf32> to vector<2x128xf32>
    %c0_148 = arith.constant 0 : index
    %c18_149 = arith.constant 18 : index
    %c0_150 = arith.constant 0 : index
    %178 = vector.load %arg5[%c0_148, %c18_149, %c0_150] : memref<2x20x128xf32, #tpu.memory_space<vmem>>, vector<1x2x128xf32>
    %179 = vector.shape_cast %178 : vector<1x2x128xf32> to vector<2x128xf32>
    %180 = vector.shape_cast %177 : vector<2x128xf32> to vector<1x2x128xf32>
    tpu.vector_store %arg5[%c0_148, %c18_149, %c0_150], %180 {strides = array<i32>} : memref<2x20x128xf32, #tpu.memory_space<vmem>>, vector<1x2x128xf32>,
    %c0_151 = arith.constant 0 : index
    %c0_152 = arith.constant 0 : index
    %c0_153 = arith.constant 0 : index
    %181 = vector.load %arg5[%c0_151, %c0_152, %c0_153] : memref<2x20x128xf32, #tpu.memory_space<vmem>>, vector<1x16x128xf32>
    %182 = vector.shape_cast %181 : vector<1x16x128xf32> to vector<16x128xf32>
    %c0_154 = arith.constant 0 : index
    %c1_155 = arith.constant 1 : index
    %c0_156 = arith.constant 0 : index
    %183 = vector.load %arg5[%c0_154, %c1_155, %c0_156] : memref<2x20x128xf32, #tpu.memory_space<vmem>>, vector<1x16x128xf32>
    %184 = vector.shape_cast %183 : vector<1x16x128xf32> to vector<16x128xf32>
    %185 = arith.addf %182, %184 : vector<16x128xf32>
    %c0_157 = arith.constant 0 : index
    %c2_158 = arith.constant 2 : index
    %c0_159 = arith.constant 0 : index
    %186 = vector.load %arg5[%c0_157, %c2_158, %c0_159] : memref<2x20x128xf32, #tpu.memory_space<vmem>>, vector<1x16x128xf32>
    %187 = vector.shape_cast %186 : vector<1x16x128xf32> to vector<16x128xf32>
    %188 = arith.addf %185, %187 : vector<16x128xf32>
    %c0_160 = arith.constant 0 : index
    %c3_161 = arith.constant 3 : index
    %c0_162 = arith.constant 0 : index
    %189 = vector.load %arg5[%c0_160, %c3_161, %c0_162] : memref<2x20x128xf32, #tpu.memory_space<vmem>>, vector<1x16x128xf32>
    %190 = vector.shape_cast %189 : vector<1x16x128xf32> to vector<16x128xf32>
    %191 = arith.addf %188, %190 : vector<16x128xf32>
    %c0_163 = arith.constant 0 : index
    %c4_164 = arith.constant 4 : index
    %c0_165 = arith.constant 0 : index
    %192 = vector.load %arg5[%c0_163, %c4_164, %c0_165] : memref<2x20x128xf32, #tpu.memory_space<vmem>>, vector<1x16x128xf32>
    %193 = vector.shape_cast %192 : vector<1x16x128xf32> to vector<16x128xf32>
    %194 = arith.addf %191, %193 : vector<16x128xf32>
    %c1_i32_166 = arith.constant 1 : i32
    %195 = tpu.dynamic_rotate %194 by %c1_i32_166 dim 1 : vector<16x128xf32>, i32 -> vector<16x128xf32>
    %196 = arith.addf %194, %195 : vector<16x128xf32>
    %c127_i32_167 = arith.constant 127 : i32
    %197 = tpu.dynamic_rotate %194 by %c127_i32_167 dim 1 : vector<16x128xf32>, i32 -> vector<16x128xf32>
    %198 = arith.addf %196, %197 : vector<16x128xf32>
    %c2_i32_168 = arith.constant 2 : i32
    %199 = tpu.dynamic_rotate %194 by %c2_i32_168 dim 1 : vector<16x128xf32>, i32 -> vector<16x128xf32>
    %200 = arith.addf %198, %199 : vector<16x128xf32>
    %c126_i32_169 = arith.constant 126 : i32
    %201 = tpu.dynamic_rotate %194 by %c126_i32_169 dim 1 : vector<16x128xf32>, i32 -> vector<16x128xf32>
    %202 = arith.addf %200, %201 : vector<16x128xf32>
    %cst_170 = arith.constant 4.000000e-02 : f32
    %203 = vector.broadcast %cst_170 : f32 to vector<16x128xf32>
    %204 = arith.mulf %202, %203 : vector<16x128xf32>
    %c0_171 = arith.constant 0 : index
    %c0_172 = arith.constant 0 : index
    %c0_173 = arith.constant 0 : index
    %205 = vector.load %arg3[%c0_171, %c0_172, %c0_173] : memref<1x16x128xf32, #tpu.memory_space<vmem>>, vector<1x16x128xf32>
    %206 = vector.shape_cast %205 : vector<1x16x128xf32> to vector<16x128xf32>
    %207 = vector.shape_cast %204 : vector<16x128xf32> to vector<1x16x128xf32>
    tpu.vector_store %arg3[%c0_171, %c0_172, %c0_173], %207 {strides = array<i32>} : memref<1x16x128xf32, #tpu.memory_space<vmem>>, vector<1x16x128xf32>,
    %c1_174 = arith.constant 1 : index
    %c2_175 = arith.constant 2 : index
    %c0_176 = arith.constant 0 : index
    %208 = vector.load %arg5[%c1_174, %c2_175, %c0_176] : memref<2x20x128xf32, #tpu.memory_space<vmem>>, vector<1x16x128xf32>
    %209 = vector.shape_cast %208 : vector<1x16x128xf32> to vector<16x128xf32>
    %210 = vector.shape_cast %167 : vector<16x128xf32> to vector<1x16x128xf32>
    tpu.vector_store %arg5[%c1_174, %c2_175, %c0_176], %210 {strides = array<i32>} : memref<2x20x128xf32, #tpu.memory_space<vmem>>, vector<1x16x128xf32>,
    %c1_177 = arith.constant 1 : index
    %c16_178 = arith.constant 16 : index
    %c0_179 = arith.constant 0 : index
    %211 = vector.load %arg5[%c1_177, %c16_178, %c0_179] : memref<2x20x128xf32, #tpu.memory_space<vmem>>, vector<1x2x128xf32>
    %212 = vector.shape_cast %211 : vector<1x2x128xf32> to vector<2x128xf32>
    %c1_180 = arith.constant 1 : index
    %c0_181 = arith.constant 0 : index
    %c0_182 = arith.constant 0 : index
    %213 = vector.load %arg5[%c1_180, %c0_181, %c0_182] : memref<2x20x128xf32, #tpu.memory_space<vmem>>, vector<1x2x128xf32>
    %214 = vector.shape_cast %213 : vector<1x2x128xf32> to vector<2x128xf32>
    %215 = vector.shape_cast %212 : vector<2x128xf32> to vector<1x2x128xf32>
    tpu.vector_store %arg5[%c1_180, %c0_181, %c0_182], %215 {strides = array<i32>} : memref<2x20x128xf32, #tpu.memory_space<vmem>>, vector<1x2x128xf32>,
    %c1_183 = arith.constant 1 : index
    %c2_184 = arith.constant 2 : index
    %c0_185 = arith.constant 0 : index
    %216 = vector.load %arg5[%c1_183, %c2_184, %c0_185] : memref<2x20x128xf32, #tpu.memory_space<vmem>>, vector<1x2x128xf32>
    %217 = vector.shape_cast %216 : vector<1x2x128xf32> to vector<2x128xf32>
    %c1_186 = arith.constant 1 : index
    %c18_187 = arith.constant 18 : index
    %c0_188 = arith.constant 0 : index
    %218 = vector.load %arg5[%c1_186, %c18_187, %c0_188] : memref<2x20x128xf32, #tpu.memory_space<vmem>>, vector<1x2x128xf32>
    %219 = vector.shape_cast %218 : vector<1x2x128xf32> to vector<2x128xf32>
    %220 = vector.shape_cast %217 : vector<2x128xf32> to vector<1x2x128xf32>
    tpu.vector_store %arg5[%c1_186, %c18_187, %c0_188], %220 {strides = array<i32>} : memref<2x20x128xf32, #tpu.memory_space<vmem>>, vector<1x2x128xf32>,
    %c1_189 = arith.constant 1 : index
    %c0_190 = arith.constant 0 : index
    %c0_191 = arith.constant 0 : index
    %221 = vector.load %arg5[%c1_189, %c0_190, %c0_191] : memref<2x20x128xf32, #tpu.memory_space<vmem>>, vector<1x16x128xf32>
    %222 = vector.shape_cast %221 : vector<1x16x128xf32> to vector<16x128xf32>
    %c1_192 = arith.constant 1 : index
    %c1_193 = arith.constant 1 : index
    %c0_194 = arith.constant 0 : index
    %223 = vector.load %arg5[%c1_192, %c1_193, %c0_194] : memref<2x20x128xf32, #tpu.memory_space<vmem>>, vector<1x16x128xf32>
    %224 = vector.shape_cast %223 : vector<1x16x128xf32> to vector<16x128xf32>
    %225 = arith.addf %222, %224 : vector<16x128xf32>
    %c1_195 = arith.constant 1 : index
    %c2_196 = arith.constant 2 : index
    %c0_197 = arith.constant 0 : index
    %226 = vector.load %arg5[%c1_195, %c2_196, %c0_197] : memref<2x20x128xf32, #tpu.memory_space<vmem>>, vector<1x16x128xf32>
    %227 = vector.shape_cast %226 : vector<1x16x128xf32> to vector<16x128xf32>
    %228 = arith.addf %225, %227 : vector<16x128xf32>
    %c1_198 = arith.constant 1 : index
    %c3_199 = arith.constant 3 : index
    %c0_200 = arith.constant 0 : index
    %229 = vector.load %arg5[%c1_198, %c3_199, %c0_200] : memref<2x20x128xf32, #tpu.memory_space<vmem>>, vector<1x16x128xf32>
    %230 = vector.shape_cast %229 : vector<1x16x128xf32> to vector<16x128xf32>
    %231 = arith.addf %228, %230 : vector<16x128xf32>
    %c1_201 = arith.constant 1 : index
    %c4_202 = arith.constant 4 : index
    %c0_203 = arith.constant 0 : index
    %232 = vector.load %arg5[%c1_201, %c4_202, %c0_203] : memref<2x20x128xf32, #tpu.memory_space<vmem>>, vector<1x16x128xf32>
    %233 = vector.shape_cast %232 : vector<1x16x128xf32> to vector<16x128xf32>
    %234 = arith.addf %231, %233 : vector<16x128xf32>
    %c1_i32_204 = arith.constant 1 : i32
    %235 = tpu.dynamic_rotate %234 by %c1_i32_204 dim 1 : vector<16x128xf32>, i32 -> vector<16x128xf32>
    %236 = arith.addf %234, %235 : vector<16x128xf32>
    %c127_i32_205 = arith.constant 127 : i32
    %237 = tpu.dynamic_rotate %234 by %c127_i32_205 dim 1 : vector<16x128xf32>, i32 -> vector<16x128xf32>
    %238 = arith.addf %236, %237 : vector<16x128xf32>
    %c2_i32_206 = arith.constant 2 : i32
    %239 = tpu.dynamic_rotate %234 by %c2_i32_206 dim 1 : vector<16x128xf32>, i32 -> vector<16x128xf32>
    %240 = arith.addf %238, %239 : vector<16x128xf32>
    %c126_i32_207 = arith.constant 126 : i32
    %241 = tpu.dynamic_rotate %234 by %c126_i32_207 dim 1 : vector<16x128xf32>, i32 -> vector<16x128xf32>
    %242 = arith.addf %240, %241 : vector<16x128xf32>
    %cst_208 = arith.constant 4.000000e-02 : f32
    %243 = vector.broadcast %cst_208 : f32 to vector<16x128xf32>
    %244 = arith.mulf %242, %243 : vector<16x128xf32>
    %c0_209 = arith.constant 0 : index
    %c0_210 = arith.constant 0 : index
    %c0_211 = arith.constant 0 : index
    %245 = vector.load %arg4[%c0_209, %c0_210, %c0_211] : memref<1x16x128xf32, #tpu.memory_space<vmem>>, vector<1x16x128xf32>
    %246 = vector.shape_cast %245 : vector<1x16x128xf32> to vector<16x128xf32>
    %247 = vector.shape_cast %244 : vector<16x128xf32> to vector<1x16x128xf32>
    tpu.vector_store %arg4[%c0_209, %c0_210, %c0_211], %247 {strides = array<i32>} : memref<1x16x128xf32, #tpu.memory_space<vmem>>, vector<1x16x128xf32>,
    return
  }
  func.func @transform_0(%arg0: i32) -> (i32, i32, i32) {
    %c0_i32 = arith.constant 0 : i32
    %c0_i32_0 = arith.constant 0 : i32
    %c0_i32_1 = arith.constant 0 : i32
    return %arg0, %c0_i32, %c0_i32_0 : i32, i32, i32
  }
  func.func @transform_1(%arg0: i32) -> (i32, i32, i32) {
    %c0_i32 = arith.constant 0 : i32
    %c0_i32_0 = arith.constant 0 : i32
    %c0_i32_1 = arith.constant 0 : i32
    return %arg0, %c0_i32, %c0_i32_0 : i32, i32, i32
  }
  func.func @transform_2(%arg0: i32) -> (i32, i32, i32) {
    %c0_i32 = arith.constant 0 : i32
    %c0_i32_0 = arith.constant 0 : i32
    %c0_i32_1 = arith.constant 0 : i32
    return %arg0, %c0_i32, %c0_i32_0 : i32, i32, i32
  }
  func.func @transform_3(%arg0: i32) -> (i32, i32, i32) {
    %c0_i32 = arith.constant 0 : i32
    %c0_i32_0 = arith.constant 0 : i32
    %c0_i32_1 = arith.constant 0 : i32
    return %arg0, %c0_i32, %c0_i32_0 : i32, i32, i32
  }
}

</mosaic_0001>

<bundles_post_ra>
// kernel: tpu_custom_call.1
= control target key start
LH: loop header
LB: loop body
LE: loop exit
PB: predicated region body
PF: predicated region fallthrough
CT: control target
= control target key end

     0   :  { %9 = vsyncpa [#allocation4], 0  ;;  %s1422_s0 = inlined_call_operand.hbm [shape: f32[2,16,128], index: 0, kind: input, shape index: {}]   ;;  %s1423_s1 = inlined_call_operand.hbm [shape: f32[2,16,128], index: 1, kind: input, shape index: {}]   ;;  %s1424_s2 = inlined_call_operand.hbm [shape: f32[2,16,128], index: 2, kind: output, shape index: {0}]   ;;  %s1425_s3 = inlined_call_operand.hbm [shape: f32[2,16,128], index: 3, kind: output, shape index: {1}]  }
   0x1   :  { %11 = vsyncpa [#allocation4 + $0x1], 0 }
   0x2   :  { %12 = vsyncpa [#allocation7], 0 }
   0x3   :  { %14 = vsyncpa [#allocation7 + $0x1], 0 }
   0x4   :  { %15 = vsyncpa [#allocation5], 0 }
   0x5   :  { %17 = vsyncpa [#allocation5 + $0x1], 0 }
   0x6   :  { %18 = vsyncpa [#allocation10], 0 }
   0x7   :  { %20 = vsyncpa [#allocation10 + $0x1], 0  ;;  %s1030_s12 = smov 0   ;;  %s1032_s13 = smov 0  }
   0x8   :  { %s1034_s14 = smov 0   ;;  %s1036_s15 = smov 0  }
   0x9 LB: > { %s1051_s16 = sadd.s32 4294967295, %s996_s15   ;;  %s740_s17 = sadd.s32 4294967294, %s996_s15   ;;  %s996_s15 = sphi %s1036_s15, %s1441_s15   ;;  %s992_s14 = sphi %s1034_s14, %s1440_s14   ;;  %s988_s13 = sphi %s1032_s13, %s1439_s13   ;;  %s984_s12 = sphi %s1030_s12, %s1438_s12  }
   0xa   : > { %s1055_s18 = sadd.s32 1, %s996_s15   ;;  %s33_s19 = sadd.s32 1, %s992_s14 }
   0xb   : > { %s30_s20 = ssub.s32 %s996_s15, %s1055_s18  ;;  %p40_p0 = scmp.ne.s32.totalorder %s992_s14, %s988_s13 }
   0xc   : > { %p31_p1 = scmp.eq.s32.totalorder %s30_s20, 0  ;;  %p41_p2 = scmp.eq.s32.totalorder %s996_s15, 0 }
   0xd   : > { %p46_p3 = scmp.ne.s32.totalorder %s988_s13, %s984_s12  ;;  %p47_p4 = scmp.eq.s32.totalorder %s1051_s16, 0 }
   0xe   : > { %s1067_s21 = scalar_select %p31_p1, %s992_s14, %s33_s19  }
   0xf   : > { %p1069_p5 = por %p41_p2, %p40_p0  ;;  %p1073_p6 = por %p47_p4, %p46_p3 }
  0x10   : > { %p96_p7 = scmp.eq.s32.totalorder %s1051_s16, 1  ;;  %p102_p8 = scmp.eq.s32.totalorder %s740_s17, 1 }
  0x11   : > { %s1429_s23 = scalar_select %p1073_p6, 1, 0 }
  0x12   : > { %p788_p10 = scmp.lt.s32.totalorder %s996_s15, 2  ;;  %p1080_p11 = por %p96_p7, %p40_p0 }
  0x13   : > { %p1084_p12 = por %p102_p8, %p46_p3  ;;  %s1089_s26 = sand.u32 1, %s992_s14  }
  0x14   : > { %s1430_s24 = scalar_select %p1080_p11, 1, 0 }
  0x15   : > { %s1431_s25 = scalar_select %p1084_p12, 1, 0 }
  0x16   : > { %s762_s27 = sshll.u32 %s996_s15, 8  ;;  %s743_s28 = sshll.u32 %s1089_s26, 4 }
  0x17   : > { %s1098_s4 = scalar_lea.hbm %s1422_s0, %s762_s27  ;;  %s152_s5 = scalar_lea.vmem [#allocation3], %s743_s28 }
  0x18   : > { %s159_s6 = sshll.u32 %s152_s5, 4  ;;  %p1104_p13 = pnand %p788_p10, %p1069_p5  ;;  %s1108_s6 = int_to_ptr.vmem [resolvable:$true] %s159_s6 }
  0x19   : > { %s149_s8 = scalar_lea.sflag [#allocation4], %s1089_s26  ;;  %s834_s9 = scalar_lea.hbm %s1098_s4, 256 }
  0x1a   : > { %p835_p0 = scmp.ne.s32.totalorder %s1098_s4, %s834_s9  ;;  %p836_p1 = pneg %p1104_p13 }
  0x1b   : > { %s839_s17 = scalar_lea.hbm %s1422_s0, 512  ;;  %p840_p4 = scmp.lt.u32.totalorder %s1098_s4, %s1422_s0 }
  0x1c   : > { %p837_p2 = pnand %p836_p1, %p835_p0  ;;  %p841_p5 = scmp.lt.u32.totalorder %s839_s17, %s834_s9 }
  0x1d   : > { %p843_p8 = scmp.lt.u32.totalorder %s834_s9, %s1098_s4 }
  0x1e   : > { %p838_p3 = pneg %p837_p2  ;;  %p842_p7 = por %p841_p5, %p840_p4 }
  0x20   : > { %p844_p10 = por %p843_p8, %p842_p7 }
  0x22   : > { %p845_p9 = pnand %p844_p10, %p838_p3 }
  0x24   : > { %848 = shalt.err (!%p845_p9)
}
  0x25   : > { %s849_s22 = scalar_lea.vmem %s1108_s6, 256  ;;  %s998_s29 = smov [#allocation3]  }
  0x26   : > { %p850_p0 = scmp.ne.s32.totalorder %s1108_s6, %s849_s22  ;;  %s854_s30 = sshll.u32 %s998_s29, 4  ;;  %s855_s30 = int_to_ptr.vmem [resolvable:$false] %s854_s30 }
  0x27   : > { %s856_s5 = scalar_lea.vmem %s855_s30, 512  ;;  %p857_p11 = scmp.lt.s32.totalorder %s1108_s6, %s855_s30 }
  0x28   : > { %p852_p2 = pnand %p850_p0, %p836_p1  ;;  %p858_p4 = scmp.lt.s32.totalorder %s856_s5, %s849_s22 }
  0x2a   : > { %p853_p12 = pneg %p852_p2  ;;  %p859_p5 = por %p858_p4, %p857_p11 }
  0x2c   : > { %p860_p7 = pnand %p859_p5, %p853_p12 }
  0x2e   : > { %863 = shalt.err (!%p860_p7)
}
  0x2f   : > { %s999_s9 = smov 128   ;;  %s1000_s10 = smov 8  }
  0x30   : > { %777 = dma.hbm_to_vmem [thread:$0]  (!%p1104_p13), %s1098_s4, 256, %s1108_s6, %s149_s8, %s999_s9, %s999_s9, %s1000_s10  }
  0x31   : > { %p749_p9 = scmp.ge.s32.totalorder %s996_s15, 1  ;;  %p188_p11 = scmp.lt.s32.totalorder %s996_s15, 3 }
  0x32   : > { %s1152_s20 = scalar_lea.hbm %s1423_s1, %s762_s27  ;;  %s173_s22 = scalar_lea.vmem [#allocation6], %s743_s28 }
  0x33   : > { %p1143_p12 = pnand %p749_p9, %p188_p11  ;;  %s180_s29 = sshll.u32 %s173_s22, 4  ;;  %s1156_s29 = int_to_ptr.vmem [resolvable:$true] %s180_s29 }
  0x34   : > { %s170_s4 = scalar_lea.sflag [#allocation7], %s1089_s26  ;;  %s864_s6 = scalar_lea.hbm %s1152_s20, 256 }
  0x35   : > { %p865_p3 = scmp.ne.s32.totalorder %s1152_s20, %s864_s6  ;;  %s869_s27 = scalar_lea.hbm %s1423_s1, 512 }
  0x36   : > { %p870_p0 = scmp.lt.u32.totalorder %s1152_s20, %s1423_s1  ;;  %p871_p2 = scmp.lt.u32.totalorder %s869_s27, %s864_s6 }
  0x37   : > { %p867_p8 = pnand %p865_p3, %p836_p1  ;;  %p873_p5 = scmp.lt.u32.totalorder %s864_s6, %s1152_s20 }
  0x38   : > { %p872_p4 = por %p871_p2, %p870_p0 }
  0x39   : > { %p868_p10 = pneg %p867_p8 }
  0x3a   : > { %p874_p7 = por %p873_p5, %p872_p4 }
  0x3c   : > { %p875_p9 = pnand %p874_p7, %p868_p10 }
  0x3e   : > { %878 = shalt.err (!%p875_p9)
}
  0x3f   : > { %s879_s28 = scalar_lea.vmem %s1156_s29, 256  ;;  %s1001_s19 = smov [#allocation6]  }
  0x40   : > { %p880_p11 = scmp.ne.s32.totalorder %s1156_s29, %s879_s28  ;;  %s884_s22 = sshll.u32 %s1001_s19, 4  ;;  %s885_s22 = int_to_ptr.vmem [resolvable:$false] %s884_s22 }
  0x41   : > { %s886_s8 = scalar_lea.vmem %s885_s22, 512  ;;  %p887_p6 = scmp.lt.s32.totalorder %s1156_s29, %s885_s22 }
  0x42   : > { %p882_p3 = pnand %p880_p11, %p836_p1  ;;  %p888_p0 = scmp.lt.s32.totalorder %s886_s8, %s879_s28 }
  0x44   : > { %p883_p8 = pneg %p882_p3  ;;  %p889_p2 = por %p888_p0, %p887_p6 }
  0x46   : > { %p890_p4 = pnand %p889_p2, %p883_p8 }
  0x48   : > { %893 = shalt.err (!%p890_p4)
}
  0x49   : > { %780 = dma.hbm_to_vmem [thread:$0]  (!%p1104_p13), %s1152_s20, 256, %s1156_s29, %s170_s4, %s999_s9, %s999_s9, %s1000_s10  }
  0x4a   : > { %192 = sbr.rel (%p1143_p12) target bundleno = 483 (0x1e3), region = 28  ;;  %s1190_s6 = sand.u32 (!%p1143_p12), 1, %s988_s13  }
  0x4b   : > { %s1193_s30 = sshll.u32 (!%p1143_p12), %s1190_s6, 4  ;;  %s195_s7 = scalar_lea.sflag (!%p1143_p12), [#allocation4], %s1190_s6 }
  0x4c   : > { %s198_s27 = scalar_lea.vmem (!%p1143_p12), [#allocation3], %s1193_s30  ;;  %p1434_p6 = scmp.ne.s32.totalorder (!%p1143_p12), %s1429_s23, 0 }
  0x51   : > { %967 = dma.done.wait (%p1434_p6), %s195_s7, 256  }
  0x52   : > { %969 = vsyncadd (%p1434_p6), %s195_s7, 4294967040  ;;  %s204_s26 = scalar_lea.sflag [#allocation7], %s1190_s6  ;;  %s207_s9 = scalar_lea.vmem [#allocation6], %s1193_s30 }
  0x53   : > { %971 = dma.done.wait (%p1434_p6), %s204_s26, 256  }
  0x54   : > { %973 = vsyncadd (%p1434_p6), %s204_s26, 4294967040  ;;  %v240_v0 = vld [vmem:[%s198_s27] sm:$0xff]  ;;  %v241_v1 = vld [vmem:[%s198_s27 + $0x8] sm:$0xff]  ;;  %s1002_s23 = smov 126   ;;  %s1003_s10 = smov 1  }
  0x55   : > { %v242_v2 = vld [vmem:[%s207_s9] sm:$0xff]  ;;  %244 = vst [vmem:[#allocation2 + $0x2] sm:$0xff] %v240_v0  ;;  %245 = vst [vmem:[#allocation2 + $0xa] sm:$0xff] %v241_v1  ;;  %v243_v3 = vld [vmem:[%s207_s9 + $0x8] sm:$0xff]  ;;  %v346_v15 = vmul.f32 %v241_v1, %v241_v1  ;;  %v1209_v18 = vmul.f32 %v240_v0, %v240_v0  ;;  %s1004_s11 = smov 127   ;;  %s1005_s20 = smov 2  }
  0x56   : > { %295 = vst [vmem:[#allocation2 + $0x1a] sm:$0xff] %v242_v2  ;;  %296 = vst [vmem:[#allocation2 + $0x22] sm:$0xff] %v243_v3  ;;  %v1207_v17 = vmul.f32 %v243_v3, %v241_v1  ;;  %v1211_v23 = vmul.f32 %v242_v2, %v240_v0  ;;  %s232_s29 = scalar_lea.vmem [#allocation8], %s1193_s30  ;;  %s764_s5 = sshll.u32 %s1051_s16, 8 }
  0x57   : > { %s596_s4 = sshll.u32 %s232_s29, 4  ;;  %s1336_s19 = scalar_lea.hbm %s1424_s2, %s764_s5  ;;  %s1329_s4 = int_to_ptr.vmem [resolvable:$true] %s596_s4 }
  0x58   : > { %s578_s22 = scalar_lea.sflag [#allocation5], %s1190_s6  ;;  %s894_s8 = scalar_lea.vmem %s1329_s4, 256 }
  0x59   : > { %p895_p13 = scmp.ne.s32.totalorder %s1329_s4, %s894_s8  ;;  %p1435_p1 = scmp.ne.s32.totalorder %s1430_s24, 0 }
  0x5a   : > { %s1006_s7 = smov [#allocation8]  }
  0x5b   : > { %p896_p12 = pnand %p895_p13, %p1435_p1  ;;  %s898_s27 = sshll.u32 %s1006_s7, 4  ;;  %s899_s27 = int_to_ptr.vmem [resolvable:$false] %s898_s27 }
  0x5c   : > { %v248_v4 = vld [vmem:[#allocation2 + $0x2] sm:$0x3]  ;;  %v251_v5 = vld [vmem:[#allocation2 + $0x8] sm:$0xff]  ;;  %v246_v12 = vld [vmem:[#allocation2 + $0x10] sm:$0x3]  ;;  %s900_s26 = scalar_lea.vmem %s899_s27, 512  ;;  %p901_p5 = scmp.lt.s32.totalorder %s1329_s4, %s899_s27 }
  0x5d   : > { %v253_v6 = vld [vmem:[#allocation2 + $0x9] sm:$0xff]  ;;  %249 = vst [vmem:[#allocation2 + $0x12] sm:$0x3] %v248_v4  ;;  %v299_v8 = vld [vmem:[#allocation2 + $0x1a] sm:$0x3]  ;;  %v302_v9 = vld [vmem:[#allocation2 + $0x20] sm:$0xff]  ;;  %p897_p10 = pneg %p896_p12  ;;  %p902_p7 = scmp.lt.s32.totalorder %s900_s26, %s894_s8 }
  0x5e   : > { %v255_v7 = vadd.f32 %v253_v6, %v251_v5  ;;  %v304_v10 = vld [vmem:[#allocation2 + $0x21] sm:$0xff]  ;;  %300 = vst [vmem:[#allocation2 + $0x2a] sm:$0x3] %v299_v8  ;;  %247 = vst [vmem:[#allocation2] sm:$0x3] %v246_v12 }
  0x5f   : > { %v306_v11 = vadd.f32 %v304_v10, %v302_v9  ;;  %v297_v13 = vld [vmem:[#allocation2 + $0x28] sm:$0x3]  ;;  %v311_v24 = vld [vmem:[#allocation2 + $0x1b] sm:$0xff]  ;;  %p903_p9 = por %p902_p7, %p901_p5 }
  0x60   : > { %298 = vst [vmem:[#allocation2 + $0x18] sm:$0x3] %v297_v13  ;;  %v259_v14 = vadd.f32 %v255_v7, %v241_v1  ;;  %v260_v19 = vld [vmem:[#allocation2 + $0x3] sm:$0xff] }
  0x61   : > { %v310_v16 = vadd.f32 %v306_v11, %v243_v3  ;;  %v264_v20 = vld [vmem:[#allocation2 + $0x4] sm:$0xff]  ;;  %v315_v28 = vld [vmem:[#allocation2 + $0x1c] sm:$0xff]  ;;  %p904_p11 = pnand %p903_p9, %p897_p10 }
  0x64   : > { %v261_v21 = vld [vmem:[#allocation2 + $0xb] sm:$0xff] }
  0x65   : > { %v265_v22 = vld [vmem:[#allocation2 + $0xc] sm:$0xff]  ;;  %v263_v25 = vadd.f32 %v261_v21, %v259_v14  ;;  %v312_v26 = vld [vmem:[#allocation2 + $0x23] sm:$0xff] }
  0x66   : > { %v316_v27 = vld [vmem:[#allocation2 + $0x24] sm:$0xff]  ;;  %348 = vst [vmem:[#allocation2 + $0xa] sm:$0xff] %v346_v15  ;;  %v314_v29 = vadd.f32 %v312_v26, %v310_v16 }
  0x67   : > { %v250_v30 = vld [vmem:[#allocation2] sm:$0xff]  ;;  %404 = vst [vmem:[#allocation2 + $0x22] sm:$0xff] %v1207_v17  ;;  %v1214_v32 = vadd.f32 %v265_v22, %v263_v25  ;;  %v301_v34 = vld [vmem:[#allocation2 + $0x18] sm:$0xff] }
  0x68   : > { %v252_v31 = vld [vmem:[#allocation2 + $0x1] sm:$0xff]  ;;  %v303_v35 = vld [vmem:[#allocation2 + $0x19] sm:$0xff]  ;;  %v1222_v36 = vadd.f32 %v316_v27, %v314_v29 }
  0x69   : > { %v254_v33 = vadd.f32 %v252_v31, %v250_v30  ;;  %347 = vst [vmem:[#allocation2 + $0x2] sm:$0xff] %v1209_v18  ;;  %403 = vst [vmem:[#allocation2 + $0x1a] sm:$0xff] %v1211_v23  ;;  %288 = vrot.lane.b32.xlu1 %v1214_v32, %s1002_s23  ;;  %270 = vrot.lane.b32.xlu0 %v1214_v32, %s1003_s10  ;;  %v305_v38 = vadd.f32 %v303_v35, %v301_v34 }
  0x6b   : > { %v258_v37 = vadd.f32 %v254_v33, %v240_v0  ;;  %v309_v42 = vadd.f32 %v305_v38, %v242_v2 }
  0x6d   : > { %v262_v39 = vadd.f32 %v260_v19, %v258_v37  ;;  %v349_v40 = vld [vmem:[#allocation2 + $0x10] sm:$0x3]  ;;  %327 = vrot.lane.b32.xlu1 %v1222_v36, %s1004_s11  ;;  %276 = vrot.lane.b32.xlu0 %v1214_v32, %s1004_s11  ;;  %v313_v49 = vadd.f32 %v311_v24, %v309_v42 }
  0x6e   : > { %350 = vst [vmem:[#allocation2] sm:$0x3] %v349_v40  ;;  %v405_v43 = vld [vmem:[#allocation2 + $0x28] sm:$0x3] }
  0x6f   : > { %v1228_v41 = vadd.f32 %v264_v20, %v262_v39  ;;  %406 = vst [vmem:[#allocation2 + $0x18] sm:$0x3] %v405_v43  ;;  %v1238_v51 = vadd.f32 %v315_v28, %v313_v49 }
  0x70   : > { %v351_v44 = vld [vmem:[#allocation2 + $0x2] sm:$0x3]  ;;  %v354_v45 = vld [vmem:[#allocation2 + $0x8] sm:$0xff]  ;;  %v407_v48 = vld [vmem:[#allocation2 + $0x1a] sm:$0x3] }
  0x71   : > { %v356_v46 = vld [vmem:[#allocation2 + $0x9] sm:$0xff]  ;;  %352 = vst [vmem:[#allocation2 + $0x12] sm:$0x3] %v351_v44  ;;  %408 = vst [vmem:[#allocation2 + $0x2a] sm:$0x3] %v407_v48  ;;  %268 = vrot.lane.b32.xlu1 %v1228_v41, %s1003_s10  ;;  %282 = vrot.lane.b32.xlu0 %v1214_v32, %s1005_s20  ;;  %v410_v52 = vld [vmem:[#allocation2 + $0x20] sm:$0xff] }
  0x72   : > { %v358_v47 = vadd.f32 %v356_v46, %v354_v45  ;;  %v412_v55 = vld [vmem:[#allocation2 + $0x21] sm:$0xff] }
  0x73   : > { %v414_v58 = vadd.f32 %v412_v55, %v410_v52  ;;  %v363_v3 = vld [vmem:[#allocation2 + $0x3] sm:$0xff]  ;;  %v419_v12 = vld [vmem:[#allocation2 + $0x1b] sm:$0xff] }
  0x74   : > { %v362_v50 = vadd.f32 %v358_v47, %v346_v15  ;;  %v367_v6 = vld [vmem:[#allocation2 + $0x4] sm:$0xff]  ;;  %v423_v14 = vld [vmem:[#allocation2 + $0x1c] sm:$0xff] }
  0x75   : > { %286 = vrot.lane.b32.xlu1 %v1228_v41, %s1002_s23  ;;  %321 = vrot.lane.b32.xlu0 %v1222_v36, %s1003_s10  ;;  %v353_v59 = vld [vmem:[#allocation2] sm:$0xff]  ;;  %v418_v61 = vadd.f32 %v414_v58, %v1207_v17 }
  0x76   : > { %v355_v60 = vld [vmem:[#allocation2 + $0x1] sm:$0xff]  ;;  %v409_v7 = vld [vmem:[#allocation2 + $0x18] sm:$0xff] }
  0x77   : > { %v357_v62 = vadd.f32 %v355_v60, %v353_v59  ;;  %v411_v8 = vld [vmem:[#allocation2 + $0x19] sm:$0xff] }
  0x78   : > { %v364_v53 = vld [vmem:[#allocation2 + $0xb] sm:$0xff]  ;;  %v420_v63 = vld [vmem:[#allocation2 + $0x23] sm:$0xff]  ;;  %v413_v10 = vadd.f32 %v411_v8, %v409_v7 }
  0x79   : > { %v368_v54 = vld [vmem:[#allocation2 + $0xc] sm:$0xff]  ;;  %v366_v56 = vadd.f32 %v364_v53, %v362_v50  ;;  %319 = vrot.lane.b32.xlu1 %v1238_v51, %s1003_s10  ;;  %333 = vrot.lane.b32.xlu0 %v1222_v36, %s1005_s20  ;;  %v422_v0 = vadd.f32 %v420_v63, %v418_v61  ;;  %v361_v1 = vadd.f32 %v357_v62, %v1209_v18  ;;  %v424_v2 = vld [vmem:[#allocation2 + $0x24] sm:$0xff] }
  0x7a   : > { %v417_v11 = vadd.f32 %v413_v10, %v1211_v23 }
  0x7b   : > { %v370_v57 = vadd.f32 %v368_v54, %v366_v56  ;;  %v1254_v4 = vadd.f32 %v424_v2, %v422_v0  ;;  %v365_v5 = vadd.f32 %v363_v3, %v361_v1 }
  0x7c   : > { %v421_v13 = vadd.f32 %v419_v12, %v417_v11 }
  0x7d   : > { %373 = vrot.lane.b32.xlu1 %v370_v57, %s1003_s10  ;;  %274 = vrot.lane.b32.xlu0 %v1228_v41, %s1004_s11  ;;  %v369_v9 = vadd.f32 %v367_v6, %v365_v5 }
  0x7e   : > { %v1269_v15 = vadd.f32 %v423_v14, %v421_v13 }
  0x81   : > { %379 = vrot.lane.b32.xlu1 %v370_v57, %s1004_s11  ;;  %280 = vrot.lane.b32.xlu0 %v1228_v41, %s1005_s20 }
  0x85   : > { %385 = vrot.lane.b32.xlu1 %v370_v57, %s1005_s20  ;;  %391 = vrot.lane.b32.xlu0 %v370_v57, %s1002_s23 }
  0x89   : > { %435 = vrot.lane.b32.xlu1 %v1254_v4, %s1004_s11  ;;  %429 = vrot.lane.b32.xlu0 %v1254_v4, %s1003_s10 }
  0x8d   : > { %377 = vrot.lane.b32.xlu1 %v369_v9, %s1004_s11  ;;  %371 = vrot.lane.b32.xlu0 %v369_v9, %s1003_s10 }
  0x91   : > { %389 = vrot.lane.b32.xlu1 %v369_v9, %s1002_s23  ;;  %383 = vrot.lane.b32.xlu0 %v369_v9, %s1005_s20 }
  0x95   : > { %339 = vrot.lane.b32.xlu1 %v1222_v36, %s1002_s23  ;;  %325 = vrot.lane.b32.xlu0 %v1238_v51, %s1004_s11 }
  0x99   : > { %441 = vrot.lane.b32.xlu1 %v1254_v4, %s1005_s20  ;;  %427 = vrot.lane.b32.xlu0 %v1269_v15, %s1003_s10 }
  0x9d   : > { %433 = vrot.lane.b32.xlu1 %v1269_v15, %s1004_s11  ;;  %331 = vrot.lane.b32.xlu0 %v1238_v51, %s1005_s20 }
  0xa1   : > { %337 = vrot.lane.b32.xlu1 %v1238_v51, %s1002_s23  ;;  %447 = vrot.lane.b32.xlu0 %v1254_v4, %s1002_s23 }
  0xa5   : > { %439 = vrot.lane.b32.xlu0 %v1269_v15, %s1005_s20  ;;  %445 = vrot.lane.b32.xlu1 %v1269_v15, %s1002_s23 }
  0xdb   : > { %v289_v16 = vpop.permute.xlu1 %288  ;;  %v271_v17 = vpop.permute.xlu0 %270 }
  0xdc   : > { %v273_v26 = vadd.f32 %v271_v17, %v1214_v32 }
  0xdf   : > { %v328_v18 = vpop.permute.xlu1 %327  ;;  %v277_v19 = vpop.permute.xlu0 %276 }
  0xe0   : > { %v279_v27 = vadd.f32 %v277_v19, %v273_v26 }
  0xe3   : > { %v269_v20 = vpop.permute.xlu1 %268  ;;  %v283_v21 = vpop.permute.xlu0 %282 }
  0xe4   : > { %v285_v30 = vadd.f32 %v283_v21, %v279_v27  ;;  %v272_v40 = vadd.f32 %v269_v20, %v1228_v41 }
  0xe6   : > { %v291_v35 = vadd.f32 %v289_v16, %v285_v30 }
  0xe7   : > { %v287_v22 = vpop.permute.xlu1 %286  ;;  %v322_v23 = vpop.permute.xlu0 %321 }
  0xe8   : > { %v1289_v42 = vmul.f32 0.04, %v291_v35  ;;  %v324_v59 = vadd.f32 %v322_v23, %v1222_v36 }
  0xea   : > { %v398_v48 = vmul.f32 %v1289_v42, %v1289_v42  ;;  %v330_v1 = vadd.f32 %v328_v18, %v324_v59 }
  0xeb   : > { %v320_v24 = vpop.permute.xlu1 %319  ;;  %v334_v25 = vpop.permute.xlu0 %333 }
  0xec   : > { %v336_v8 = vadd.f32 %v334_v25, %v330_v1  ;;  %v323_v12 = vadd.f32 %v320_v24, %v1238_v51 }
  0xef   : > { %v374_v28 = vpop.permute.xlu1 %373  ;;  %v275_v29 = vpop.permute.xlu0 %274 }
  0xf0   : > { %v376_v31 = vadd.f32 %v374_v28, %v370_v57  ;;  %v278_v44 = vadd.f32 %v275_v29, %v272_v40 }
  0xf3   : > { %v380_v33 = vpop.permute.xlu1 %379  ;;  %v281_v34 = vpop.permute.xlu0 %280 }
  0xf4   : > { %v382_v37 = vadd.f32 %v380_v33, %v376_v31  ;;  %v284_v47 = vadd.f32 %v281_v34, %v278_v44 }
  0xf6   : > { %v290_v54 = vadd.f32 %v287_v22, %v284_v47 }
  0xf7   : > { %v386_v38 = vpop.permute.xlu1 %385  ;;  %v392_v39 = vpop.permute.xlu0 %391 }
  0xf8   : > { %v388_v43 = vadd.f32 %v386_v38, %v382_v37  ;;  %v292_v60 = vmul.f32 0.04, %v290_v54 }
  0xfa   : > { %v394_v45 = vadd.f32 %v392_v39, %v388_v43  ;;  %v397_v2 = vmul.f32 %v292_v60, %v292_v60 }
  0xfb   : > { %v436_v46 = vpop.permute.xlu1 %435  ;;  %v430_v32 = vpop.permute.xlu0 %429 }
  0xfc   : > { %v396_v49 = vmul.f32 0.04, %v394_v45 }
  0xfe   : > { %v400_v50 = vsub.f32 %v396_v49, %v398_v48 }
  0xff   : > { %v378_v52 = vpop.permute.xlu1 %377  ;;  %v372_v53 = vpop.permute.xlu0 %371 }
 0x100   : > { %v458_v55 = vadd.f32 1e-09, %v400_v50  ;;  %v375_v56 = vadd.f32 %v372_v53, %v369_v9  ;;  %v432_v9 = vadd.f32 %v430_v32, %v1254_v4 }
 0x102   : > { %v381_v57 = vadd.f32 %v378_v52, %v375_v56  ;;  %830 = vrcp.f32 %v458_v55  ;;  %v438_v19 = vadd.f32 %v436_v46, %v432_v9 }
 0x103   : > { %v390_v41 = vpop.permute.xlu1 %389  ;;  %v384_v58 = vpop.permute.xlu0 %383 }
 0x104   : > { %v387_v61 = vadd.f32 %v384_v58, %v381_v57 }
 0x106   : > { %v393_v62 = vadd.f32 %v390_v41, %v387_v61 }
 0x107   : > { %v340_v63 = vpop.permute.xlu1 %339  ;;  %v326_v0 = vpop.permute.xlu0 %325 }
 0x108   : > { %v395_v3 = vmul.f32 0.04, %v393_v62  ;;  %v342_v36 = vadd.f32 %v340_v63, %v336_v8  ;;  %v329_v17 = vadd.f32 %v326_v0, %v323_v12 }
 0x10a   : > { %v399_v5 = vsub.f32 %v395_v3, %v397_v2  ;;  %v344_v18 = vmul.f32 0.04, %v342_v36 }
 0x10b   : > { %v442_v6 = vpop.permute.xlu1 %441  ;;  %v428_v7 = vpop.permute.xlu0 %427 }
 0x10c   : > { %v457_v10 = vadd.f32 1e-09, %v399_v5  ;;  %v831_v11 = vpop.eup %830  ;;  %v444_v20 = vadd.f32 %v442_v6, %v438_v19  ;;  %v431_v25 = vadd.f32 %v428_v7, %v1269_v15  ;;  %v454_v28 = vmul.f32 %v344_v18, %v1289_v42 }
 0x10d   : > { %v462_v16 = vmul.f32 %v831_v11, %v458_v55 }
 0x10e   : > { %832 = vrcp.f32 %v457_v10 }
 0x10f   : > { %v434_v13 = vpop.permute.xlu1 %433  ;;  %v332_v14 = vpop.permute.xlu0 %331  ;;  %v464_v26 = vsub.f32 2.0, %v462_v16 }
 0x110   : > { %v335_v21 = vadd.f32 %v332_v14, %v329_v17  ;;  %v437_v51 = vadd.f32 %v434_v13, %v431_v25 }
 0x111   : > { %v466_v34 = vmul.f32 %v831_v11, %v464_v26 }
 0x113   : > { %v338_v22 = vpop.permute.xlu1 %337  ;;  %v448_v23 = vpop.permute.xlu0 %447 }
 0x114   : > { %v341_v4 = vadd.f32 %v338_v22, %v335_v21  ;;  %v450_v27 = vadd.f32 %v448_v23, %v444_v20 }
 0x116   : > { %v452_v24 = vmul.f32 0.04, %v450_v27  ;;  %v343_v33 = vmul.f32 0.04, %v341_v4 }
 0x117   : > { %v440_v29 = vpop.permute.xlu0 %439  ;;  %v446_v30 = vpop.permute.xlu1 %445 }
 0x118   : > { %v833_v31 = vpop.eup %832  ;;  %v456_v35 = vsub.f32 %v452_v24, %v454_v28  ;;  %v443_v37 = vadd.f32 %v440_v29, %v437_v51  ;;  %v453_v44 = vmul.f32 %v343_v33, %v292_v60 }
 0x119   : > { %v461_v38 = vmul.f32 %v833_v31, %v457_v10 }
 0x11a   : > { %v468_v39 = vmul.f32 %v466_v34, %v456_v35  ;;  %v449_v40 = vadd.f32 %v446_v30, %v443_v37 }
 0x11b   : > { %v463_v43 = vsub.f32 2.0, %v461_v38 }
 0x11c   : > { %v470_v15 = vmul.f32 %v468_v39, %v1289_v42  ;;  %474 = vst [vmem:[#allocation2 + $0xa] sm:$0xff] %v468_v39  ;;  %v451_v45 = vmul.f32 0.04, %v449_v40 }
 0x11d   : > { %v465_v46 = vmul.f32 %v833_v31, %v463_v43 }
 0x11e   : > { %v472_v32 = vsub.f32 %v344_v18, %v470_v15  ;;  %v455_v47 = vsub.f32 %v451_v45, %v453_v44 }
 0x120   : > { %526 = vst [vmem:[#allocation2 + $0x22] sm:$0xff] %v472_v32  ;;  %v467_v48 = vmul.f32 %v465_v46, %v455_v47 }
 0x122   : > { %v469_v49 = vmul.f32 %v467_v48, %v292_v60  ;;  %473 = vst [vmem:[#allocation2 + $0x2] sm:$0xff] %v467_v48 }
 0x123   : > { %v475_v50 = vld [vmem:[#allocation2 + $0x10] sm:$0x3] }
 0x124   : > { %v471_v52 = vsub.f32 %v343_v33, %v469_v49  ;;  %476 = vst [vmem:[#allocation2] sm:$0x3] %v475_v50 }
 0x126   : > { %525 = vst [vmem:[#allocation2 + $0x1a] sm:$0xff] %v471_v52 }
 0x127   : > { %v527_v53 = vld [vmem:[#allocation2 + $0x28] sm:$0x3] }
 0x128   : > { %528 = vst [vmem:[#allocation2 + $0x18] sm:$0x3] %v527_v53 }
 0x129   : > { %v477_v54 = vld [vmem:[#allocation2 + $0x2] sm:$0x3]  ;;  %v480_v55 = vld [vmem:[#allocation2 + $0x8] sm:$0xff] }
 0x12a   : > { %478 = vst [vmem:[#allocation2 + $0x12] sm:$0x3] %v477_v54  ;;  %v482_v56 = vld [vmem:[#allocation2 + $0x9] sm:$0xff] }
 0x12b   : > { %v479_v42 = vld [vmem:[#allocation2] sm:$0xff]  ;;  %v484_v58 = vadd.f32 %v482_v56, %v480_v55 }
 0x12c   : > { %v481_v57 = vld [vmem:[#allocation2 + $0x1] sm:$0xff] }
 0x12d   : > { %v483_v41 = vadd.f32 %v481_v57, %v479_v42  ;;  %v529_v59 = vld [vmem:[#allocation2 + $0x1a] sm:$0x3]  ;;  %v489_v62 = vld [vmem:[#allocation2 + $0x3] sm:$0xff]  ;;  %v488_v63 = vadd.f32 %v484_v58, %v468_v39 }
 0x12e   : > { %530 = vst [vmem:[#allocation2 + $0x2a] sm:$0x3] %v529_v59  ;;  %v493_v0 = vld [vmem:[#allocation2 + $0x4] sm:$0xff]  ;;  %v541_v13 = vld [vmem:[#allocation2 + $0x1b] sm:$0xff] }
 0x12f   : > { %v487_v61 = vadd.f32 %v483_v41, %v467_v48  ;;  %v531_v6 = vld [vmem:[#allocation2 + $0x18] sm:$0xff]  ;;  %v532_v10 = vld [vmem:[#allocation2 + $0x20] sm:$0xff] }
 0x130   : > { %v533_v7 = vld [vmem:[#allocation2 + $0x19] sm:$0xff]  ;;  %v534_v11 = vld [vmem:[#allocation2 + $0x21] sm:$0xff] }
 0x131   : > { %v491_v60 = vadd.f32 %v489_v62, %v487_v61  ;;  %v490_v1 = vld [vmem:[#allocation2 + $0xb] sm:$0xff]  ;;  %v535_v9 = vadd.f32 %v533_v7, %v531_v6  ;;  %v536_v36 = vadd.f32 %v534_v11, %v532_v10  ;;  %v545_v18 = vld [vmem:[#allocation2 + $0x1c] sm:$0xff] }
 0x132   : > { %v492_v3 = vadd.f32 %v490_v1, %v488_v63  ;;  %v494_v5 = vld [vmem:[#allocation2 + $0xc] sm:$0xff] }
 0x133   : > { %v495_v2 = vadd.f32 %v493_v0, %v491_v60  ;;  %v539_v12 = vadd.f32 %v535_v9, %v471_v52  ;;  %v540_v17 = vadd.f32 %v536_v36, %v472_v32 }
 0x134   : > { %v496_v8 = vadd.f32 %v494_v5, %v492_v3 }
 0x135   : > { %497 = vrot.lane.b32.xlu0 %v495_v2, %s1003_s10  ;;  %v542_v14 = vld [vmem:[#allocation2 + $0x23] sm:$0xff]  ;;  %v543_v16 = vadd.f32 %v541_v13, %v539_v12 }
 0x136   : > { %499 = vrot.lane.b32.xlu1 %v496_v8, %s1003_s10  ;;  %v544_v19 = vadd.f32 %v542_v14, %v540_v17  ;;  %v546_v21 = vld [vmem:[#allocation2 + $0x24] sm:$0xff] }
 0x137   : > { %v1307_v20 = vadd.f32 %v545_v18, %v543_v16 }
 0x138   : > { %v1311_v22 = vadd.f32 %v546_v21, %v544_v19 }
 0x139   : > { %503 = vrot.lane.b32.xlu0 %v495_v2, %s1004_s11 }
 0x13a   : > { %505 = vrot.lane.b32.xlu1 %v496_v8, %s1004_s11 }
 0x13d   : > { %509 = vrot.lane.b32.xlu0 %v495_v2, %s1005_s20 }
 0x13e   : > { %511 = vrot.lane.b32.xlu1 %v496_v8, %s1005_s20 }
 0x141   : > { %515 = vrot.lane.b32.xlu0 %v495_v2, %s1002_s23 }
 0x142   : > { %517 = vrot.lane.b32.xlu1 %v496_v8, %s1002_s23 }
 0x145   : > { %549 = vrot.lane.b32.xlu0 %v1307_v20, %s1003_s10 }
 0x146   : > { %551 = vrot.lane.b32.xlu1 %v1311_v22, %s1003_s10 }
 0x149   : > { %555 = vrot.lane.b32.xlu0 %v1307_v20, %s1004_s11 }
 0x14a   : > { %557 = vrot.lane.b32.xlu1 %v1311_v22, %s1004_s11 }
 0x14d   : > { %561 = vrot.lane.b32.xlu0 %v1307_v20, %s1005_s20 }
 0x14e   : > { %563 = vrot.lane.b32.xlu1 %v1311_v22, %s1005_s20 }
 0x151   : > { %567 = vrot.lane.b32.xlu0 %v1307_v20, %s1002_s23 }
 0x152   : > { %569 = vrot.lane.b32.xlu1 %v1311_v22, %s1002_s23 }
 0x1a7   : > { %v498_v23 = vpop.permute.xlu0 %497 }
 0x1a8   : > { %v500_v26 = vpop.permute.xlu1 %499  ;;  %v501_v27 = vadd.f32 %v498_v23, %v495_v2 }
 0x1a9   : > { %v502_v51 = vadd.f32 %v500_v26, %v496_v8 }
 0x1ab   : > { %v504_v25 = vpop.permute.xlu0 %503 }
 0x1ac   : > { %v506_v4 = vpop.permute.xlu1 %505  ;;  %v507_v24 = vadd.f32 %v504_v25, %v501_v27 }
 0x1ad   : > { %v508_v30 = vadd.f32 %v506_v4, %v502_v51 }
 0x1af   : > { %v510_v28 = vpop.permute.xlu0 %509 }
 0x1b0   : > { %v512_v29 = vpop.permute.xlu1 %511  ;;  %v513_v31 = vadd.f32 %v510_v28, %v507_v24 }
 0x1b1   : > { %v514_v34 = vadd.f32 %v512_v29, %v508_v30 }
 0x1b3   : > { %v516_v33 = vpop.permute.xlu0 %515 }
 0x1b4   : > { %v519_v35 = vadd.f32 %v516_v33, %v513_v31  ;;  %v518_v37 = vpop.permute.xlu1 %517 }
 0x1b5   : > { %v520_v39 = vadd.f32 %v518_v37, %v514_v34 }
 0x1b6   : > { %v521_v38 = vmul.f32 0.04, %v519_v35 }
 0x1b7   : > { %v550_v40 = vpop.permute.xlu0 %549  ;;  %v522_v43 = vmul.f32 0.04, %v520_v39 }
 0x1b8   : > { %523 = vst [vmem:[%s232_s29] sm:$0xff] %v521_v38  ;;  %v552_v44 = vpop.permute.xlu1 %551 }
 0x1b9   : > { %524 = vst [vmem:[%s232_s29 + $0x8] sm:$0xff] %v522_v43 }
 0x1bb   : > { %v556_v15 = vpop.permute.xlu0 %555 }
 0x1bc   : > { %907 = shalt.err (!%p904_p11)
}
 0x1bd   : > { %s908_s9 = scalar_lea.hbm %s1336_s19, 256  ;;  %s912_s11 = scalar_lea.hbm %s1424_s2, 512 }
 0x1be   : > { %p909_p3 = scmp.ne.s32.totalorder %s1336_s19, %s908_s9  ;;  %p913_p2 = scmp.lt.u32.totalorder %s1336_s19, %s1424_s2 }
 0x1bf   : > { %p914_p4 = scmp.lt.u32.totalorder %s912_s11, %s908_s9  ;;  %p916_p13 = scmp.lt.u32.totalorder %s908_s9, %s1336_s19 }
 0x1c0   : > { %p910_p8 = pnand %p909_p3, %p1435_p1 }
 0x1c1   : > { %p915_p6 = por %p914_p4, %p913_p2 }
 0x1c2   : > { %p911_p0 = pneg %p910_p8 }
 0x1c3   : > { %p917_p12 = por %p916_p13, %p915_p6 }
 0x1c5   : > { %p918_p10 = pnand %p917_p12, %p911_p0 }
 0x1c7   : > { %921 = shalt.err (!%p918_p10)
}
 0x1c8   : > { %s1007_s17 = smov 128   ;;  %s1008_s28 = smov 8   ;;  %v558_v45 = vpop.permute.xlu1 %557  ;;  %v553_v46 = vadd.f32 %v550_v40, %v1307_v20  ;;  %v562_v32 = vpop.permute.xlu0 %561  ;;  %v554_v47 = vadd.f32 %v552_v44, %v1311_v22 }
 0x1c9   : > { %770 = dma.vmem_to_hbm [thread:$0]  (%p1435_p1), %s1329_s4, 256, %s1336_s19, %s578_s22, %s1007_s17, %s1007_s17, %s1008_s28  }
 0x1ca   : > { %v559_v48 = vadd.f32 %v556_v15, %v553_v46  ;;  %v560_v50 = vadd.f32 %v558_v45, %v554_v47  ;;  %s239_s8 = scalar_lea.vmem [#allocation9], %s1193_s30  ;;  %s1375_s22 = scalar_lea.hbm %s1425_s3, %s764_s5 }
 0x1cb   : > { %s612_s7 = sshll.u32 %s239_s8, 4  ;;  %s583_s30 = scalar_lea.sflag [#allocation10], %s1190_s6  ;;  %s1368_s7 = int_to_ptr.vmem [resolvable:$true] %s612_s7 }
 0x1cc   : > { %v564_v49 = vpop.permute.xlu1 %563  ;;  %v565_v52 = vadd.f32 %v562_v32, %v559_v48  ;;  %v568_v53 = vpop.permute.xlu0 %567  ;;  %s922_s27 = scalar_lea.vmem %s1368_s7, 256  ;;  %s1009_s26 = smov [#allocation9]  }
 0x1cd   : > { %v566_v54 = vadd.f32 %v564_v49, %v560_v50  ;;  %p923_p5 = scmp.ne.s32.totalorder %s1368_s7, %s922_s27  ;;  %s926_s9 = sshll.u32 %s1009_s26, 4  ;;  %s927_s9 = int_to_ptr.vmem [resolvable:$false] %s926_s9 }
 0x1ce   : > { %v571_v55 = vadd.f32 %v568_v53, %v565_v52  ;;  %s928_s23 = scalar_lea.vmem %s927_s9, 512  ;;  %p929_p11 = scmp.lt.s32.totalorder %s1368_s7, %s927_s9 }
 0x1cf   : > { %p924_p7 = pnand %p923_p5, %p1435_p1  ;;  %p930_p3 = scmp.lt.s32.totalorder %s928_s23, %s922_s27 }
 0x1d0   : > { %v570_v56 = vpop.permute.xlu1 %569  ;;  %v573_v42 = vmul.f32 0.04, %v571_v55 }
 0x1d1   : > { %v572_v57 = vadd.f32 %v570_v56, %v566_v54  ;;  %p925_p9 = pneg %p924_p7  ;;  %p931_p8 = por %p930_p3, %p929_p11 }
 0x1d2   : > { %575 = vst [vmem:[%s239_s8] sm:$0xff] %v573_v42 }
 0x1d3   : > { %v574_v41 = vmul.f32 0.04, %v572_v57  ;;  %p932_p0 = pnand %p931_p8, %p925_p9 }
 0x1d5   : > { %576 = vst [vmem:[%s239_s8 + $0x8] sm:$0xff] %v574_v41 }
 0x1d6   : > { %935 = shalt.err (!%p932_p0)
}
 0x1d7   : > { %s936_s16 = scalar_lea.hbm %s1375_s22, 256  ;;  %s940_s11 = scalar_lea.hbm %s1425_s3, 512 }
 0x1d8   : > { %p937_p2 = scmp.ne.s32.totalorder %s1375_s22, %s936_s16  ;;  %p941_p13 = scmp.lt.u32.totalorder %s1375_s22, %s1425_s3 }
 0x1d9   : > { %p942_p12 = scmp.lt.u32.totalorder %s940_s11, %s936_s16  ;;  %p944_p5 = scmp.lt.u32.totalorder %s936_s16, %s1375_s22 }
 0x1da   : > { %p938_p4 = pnand %p937_p2, %p1435_p1 }
 0x1db   : > { %p943_p10 = por %p942_p12, %p941_p13 }
 0x1dc   : > { %p939_p6 = pneg %p938_p4 }
 0x1dd   : > { %p945_p7 = por %p944_p5, %p943_p10 }
 0x1df   : > { %p946_p9 = pnand %p945_p7, %p939_p6 }
 0x1e1   : > { %949 = shalt.err (!%p946_p9)
}
 0x1e2   : > { %771 = dma.vmem_to_hbm [thread:$0]  (%p1435_p1), %s1368_s7, 256, %s1375_s22, %s583_s30, %s1007_s17, %s1007_s17, %s1008_s28  }
 0x1e3 PF: > { %s627_s8 = sand.u32 1, %s984_s12   ;;  %p1436_p11 = scmp.ne.s32.totalorder %s1431_s25, 0 }
 0x1e4   : > { %p1437_p3 = scmp.ge.s32.totalorder %s996_s15, 2  ;;  %s628_s4 = scalar_lea.sflag [#allocation5], %s627_s8 }
 0x1e6   : > { %p782_p8 = pnand %p1437_p3, %p1436_p11 }
 0x1e8   : > { %975 = dma.done.wait (!%p782_p8), %s628_s4, 256  }
 0x1e9   : > { %977 = vsyncadd (!%p782_p8), %s628_s4, 4294967040  ;;  %s637_s24 = scalar_lea.sflag [#allocation10], %s627_s8 }
 0x1ea   : > { %979 = dma.done.wait (!%p782_p8), %s637_s24, 256  }
 0x1eb   : > { %981 = vsyncadd (!%p782_p8), %s637_s24, 4294967040  ;;  %p23_p1 = scmp.ge.s32.totalorder %s1055_s18, 4   ;;  %s1438_s12 = smov %s988_s13 }
 0x1ec   : > { %s1439_s13 = smov %s992_s14  ;;  %s1440_s14 = smov %s1067_s21 }
 0x1ed   : > { %s1441_s15 = smov %s1055_s18  ;;  %25 = sbr.rel (!%p23_p1) target bundleno = 9 (0x9), region = 104 }
 0x1f4   :  { %642 = vsyncpa [#allocation4], 1 }
 0x1f5   :  { %644 = vsyncpa [#allocation4 + $0x1], 1 }
 0x1f6   :  { %645 = vsyncpa [#allocation7], 1 }
 0x1f7   :  { %647 = vsyncpa [#allocation7 + $0x1], 1 }
 0x1f8   :  { %648 = vsyncpa [#allocation5], 1 }
 0x1f9   :  { %650 = vsyncpa [#allocation5 + $0x1], 1 }
 0x1fa   :  { %651 = vsyncpa [#allocation10], 1 }
 0x1fb   :  { %653 = vsyncpa [#allocation10 + $0x1], 1 }

</bundles_post_ra>
